<compile_context>
chip_gen: v5e
topology: v5e:2x2
jax: 0.10.0
libtpu: 0.0.40
codegen_flags: <defaults>
</compile_context>

<pallas_src>
import jax
import jax.numpy as jnp
import numpy as np
from jax.experimental import pallas as pl
from jax.experimental.pallas import tpu as pltpu

# ----------------------------- configuration --------------------------------
B = 2                 # batch
LATENT = 16           # latent_dim
HIDDEN = 32           # hidden_dim
NODE_FEATURES = 8
MAX_NODES = 8
NUM_DEC_LAYERS = 2
HEADS = 4
HEAD_DIM = HIDDEN // HEADS
GAT_IN = HIDDEN + LATENT
NUM_BOND_TYPES = 4
LORA_R = 4
LORA_ALPHA = 1.0
LORA_SCALING = LORA_ALPHA / LORA_R
NEG_SLOPE = 0.2       # GATConv LeakyReLU default negative slope

BN = B * MAX_NODES            # 16 flat node rows
NH = BN * HEADS               # 64 attention lanes (source-row * head)
LANES = 128                   # slab / output lane width

OUT_COLS = NODE_FEATURES + 2 + 2 * NUM_BOND_TYPES     # 18
C_NODE = 0
C_U = NODE_FEATURES
C_V = C_U + 1
C_UB = C_V + 1
C_VB = C_UB + NUM_BOND_TYPES
C_BOND0 = NODE_FEATURES + MAX_NODES                   # output col of bond block

# --------------------------- merged slab layout ------------------------------
R_TTILE = 0                                   # [L, N*L]    z lane-tiling matrix
R_MASKZ = R_TTILE + LATENT                    # [BN, N*L]   per-row node selector
R_WBIG = R_MASKZ + BN                         # [N*L, 3*H]  [W1_re | Wz0 | Wz1]
R_B1 = R_WBIG + MAX_NODES * LATENT            # [BN, H]     per-row z_to_nodes bias
R_LAYER0 = R_B1 + BN                          # per-layer blocks
LAYER_STRIDE = 2 * HIDDEN + 8                 #   [H,H] Wg_x | [H,128] att_w | [1,H] bg
R_ROWMASK = R_LAYER0 + NUM_DEC_LAYERS * LAYER_STRIDE   # [BN, NH]
R_ONESB = R_ROWMASK + BN                      # [BN, BN]    same-batch ones
R_NEGMASK = R_ONESB + BN                      # [BN, NH]    cross-batch -1e9
R_GSUM = R_NEGMASK + BN                       # [NH, NH]    per-head lane-sum
R_STACKJ = R_GSUM + NH                        # [NH, BN]    source-row replicator
R_HEADM = R_STACKJ + NH                       # [NH, H]     head -> feature mask
R_WOUT = R_HEADM + NH                         # [H, 18]     fused output weights
R_TILEJ4 = R_WOUT + HIDDEN                    # [T, N*T]    bond tile-over-j
R_DIAGJ8 = R_TILEJ4 + 8                       # [BN, N]     lane == own node
R_DIAGJ32 = R_DIAGJ8 + BN                     # [BN, N*T]
R_UP8 = R_DIAGJ32 + BN                        # [BN, N]     i < j
R_LO8 = R_UP8 + BN                            # [BN, N]     i > j
R_UP32 = R_LO8 + BN                           # [BN, N*T]
R_LO32 = R_UP32 + BN                          # [BN, N*T]
R_PLR = R_LO32 + BN                           # [F, 128]    place recon at 0:8
R_PLA = R_PLR + NODE_FEATURES                 # [N, 128]    place adj at 8:16
R_PLB = R_PLA + MAX_NODES                     # [N*T, 128]  place bond at 16:48
R_BIAS = R_PLB + MAX_NODES * NUM_BOND_TYPES   # [1, 128]    bnode | badj | bbond(tiled)
TOTAL_ROWS = R_BIAS + 8                       # 752


# ------------------------------ Pallas kernel -------------------------------
def decoder_kernel(z_ref, s_ref, out_ref):
    f32 = jnp.float32
    z = z_ref[...]                                                    # [B, L]

    # z replicated per node row (safe leading-dim collapse)
    z_rep = jnp.broadcast_to(z[:, None, :],
                             (B, MAX_NODES, LATENT)).reshape(BN, LATENT)

    # node-selective latent: z_sel[r, n*L+l] = z[b(r), l] * (n == node(r))
    t_tile = s_ref[R_TTILE:R_TTILE + LATENT, :]                       # [L, N*L]
    mask_z = s_ref[R_MASKZ:R_MASKZ + BN, :]                           # [BN, N*L]
    z_sel = jnp.dot(z_rep, t_tile, preferred_element_type=f32) * mask_z

    # fused first projection: [x_pre | zproj_layer0 | zproj_layer1]  -> [BN, 96]
    w_big = s_ref[R_WBIG:R_WBIG + MAX_NODES * LATENT,
                  0:HIDDEN * (1 + NUM_DEC_LAYERS)]
    big = jnp.dot(z_sel, w_big, preferred_element_type=f32)
    b1 = s_ref[R_B1:R_B1 + BN, 0:HIDDEN]
    x2d = jnp.maximum(big[:, 0:HIDDEN] + b1, 0.0)                     # [BN, H]

    # shared attention constants
    rowmask = s_ref[R_ROWMASK:R_ROWMASK + BN, 0:NH]                   # [BN, NH]
    onesb = s_ref[R_ONESB:R_ONESB + BN, 0:BN]                         # [BN, BN]
    negmask = s_ref[R_NEGMASK:R_NEGMASK + BN, 0:NH]                   # [BN, NH]
    gsum = s_ref[R_GSUM:R_GSUM + NH, 0:NH]                            # [NH, NH]
    stackj = s_ref[R_STACKJ:R_STACKJ + NH, 0:BN]                      # [NH, BN]
    headm = s_ref[R_HEADM:R_HEADM + NH, 0:HIDDEN]                     # [NH, H]

    # ---- GAT layers: dense fully-connected attention, [BN, NH] lane layout ----
    for layer in range(NUM_DEC_LAYERS):
        base = R_LAYER0 + layer * LAYER_STRIDE
        wg_x = s_ref[base:base + HIDDEN, 0:HIDDEN]                    # [H, H]
        att_w = s_ref[base + HIDDEN:base + 2 * HIDDEN, :]             # [H, 2*NH]
        bg = s_ref[base + 2 * HIDDEN:base + 2 * HIDDEN + 1, 0:HIDDEN]  # [1, H]
        zrep = big[:, HIDDEN * (1 + layer):HIDDEN * (2 + layer)]      # [BN, H]

        # h = [x, z_rep] @ Wg   (z part precomputed in `big`)
        h2d = jnp.dot(x2d, wg_x, preferred_element_type=f32) + zrep   # [BN, H]

        # src/dst scores pre-tiled over source lanes: sw[:,0:NH]=src, [:,NH:]=dst
        sw = jnp.dot(h2d, att_w, preferred_element_type=f32)          # [BN, 2*NH]
        src_t = sw[:, 0:NH]
        dst_t = sw[:, NH:2 * NH]
        # gather every same-batch source row's score into the lane axis
        src_rows = jnp.dot(onesb, src_t * rowmask,
                           preferred_element_type=f32)                # [BN, NH]
        e = dst_t + src_rows
        e = jnp.where(e > 0, e, NEG_SLOPE * e) + negmask              # mask x-batch
        e = e - jnp.max(e, axis=-1, keepdims=True)                    # valid shift
        p = jnp.exp(e)
        denom = jnp.dot(p, gsum, preferred_element_type=f32)          # per-head sum
        attn = p * pl.reciprocal(denom, approx=True)                  # [BN, NH]

        # head-wise aggregation fully on the MXU:
        # M[r'*4+k, d] = h[r', d] * (head(d) == k) ;  out = attn @ M
        m = jnp.dot(stackj, h2d, preferred_element_type=f32) * headm  # [NH, H]
        out = jnp.dot(attn, m, preferred_element_type=f32)            # [BN, H]
        x2d = jnp.maximum(out + bg, 0.0)

    # ---- fused output heads ----
    w_out = s_ref[R_WOUT:R_WOUT + HIDDEN, 0:OUT_COLS]                 # [H, 18]
    y = jnp.dot(x2d, w_out, preferred_element_type=f32)               # [BN, 18]
    bias = s_ref[R_BIAS:R_BIAS + 1, :]                                # [1, 128]

    recon_v = y[:, C_NODE:C_NODE + NODE_FEATURES] + bias[:, 0:NODE_FEATURES]

    diagj8 = s_ref[R_DIAGJ8:R_DIAGJ8 + BN, 0:MAX_NODES]
    diagj32 = s_ref[R_DIAGJ32:R_DIAGJ32 + BN, 0:MAX_NODES * NUM_BOND_TYPES]
    up8 = s_ref[R_UP8:R_UP8 + BN, 0:MAX_NODES]
    lo8 = s_ref[R_LO8:R_LO8 + BN, 0:MAX_NODES]
    up32 = s_ref[R_UP32:R_UP32 + BN, 0:MAX_NODES * NUM_BOND_TYPES]
    lo32 = s_ref[R_LO32:R_LO32 + BN, 0:MAX_NODES * NUM_BOND_TYPES]
    tilej4 = s_ref[R_TILEJ4:R_TILEJ4 + NUM_BOND_TYPES,
                   0:MAX_NODES * NUM_BOND_TYPES]

    # adjacency logits (row i, lane j): i<j -> u_i+v_j+b ; i>j -> u_j+v_i+b ; diag 0
    u = y[:, C_U:C_U + 1]                                             # [BN, 1]
    v = y[:, C_V:C_V + 1]
    badj = bias[:, NODE_FEATURES:NODE_FEATURES + 1]                   # [1, 1]
    u_rows = jnp.dot(onesb, u * diagj8, preferred_element_type=f32)   # u_j per lane
    v_rows = jnp.dot(onesb, v * diagj8, preferred_element_type=f32)
    adj_main = u + v_rows + badj
    adj_mirr = v + u_rows + badj
    adjv = up8 * adj_main + lo8 * adj_mirr                            # [BN, N]

    # bond-type logits (row i, lane j*T+t)
    ub = y[:, C_UB:C_UB + NUM_BOND_TYPES]
    vb = y[:, C_VB:C_VB + NUM_BOND_TYPES]
    bbond = bias[:, C_BOND0:C_BOND0 + MAX_NODES * NUM_BOND_TYPES]     # [1, 32]
    ub_self = jnp.dot(ub, tilej4, preferred_element_type=f32)         # [BN, 32]
    vb_self = jnp.dot(vb, tilej4, preferred_element_type=f32)
    ub_rows = jnp.dot(onesb, ub_self * diagj32, preferred_element_type=f32)
    vb_rows = jnp.dot(onesb, vb_self * diagj32, preferred_element_type=f32)
    bond_main = ub_self + vb_rows + bbond
    bond_mirr = vb_self + ub_rows + bbond
    bondv = up32 * bond_main + lo32 * bond_mirr                       # [BN, 32]

    # single lane-dense output slab: one unmasked full store
    pl_r = s_ref[R_PLR:R_PLR + NODE_FEATURES, :]
    pl_a = s_ref[R_PLA:R_PLA + MAX_NODES, :]
    pl_b = s_ref[R_PLB:R_PLB + MAX_NODES * NUM_BOND_TYPES, :]
    out128 = (jnp.dot(recon_v, pl_r, preferred_element_type=f32)
              + jnp.dot(adjv, pl_a, preferred_element_type=f32)
              + jnp.dot(bondv, pl_b, preferred_element_type=f32))
    out_ref[...] = out128


# ------------------------------ JAX wrapper ----------------------------------
def mpnn_decoder_forward(z, slab):
    vmem = pl.BlockSpec(memory_space=pltpu.MemorySpace.VMEM)
    out = pl.pallas_call(
        decoder_kernel,
        out_shape=jax.ShapeDtypeStruct((BN, LANES), jnp.float32),
        in_specs=[vmem, vmem],
        out_specs=vmem,
    )(z, slab)
    recon = out[:, 0:NODE_FEATURES].reshape(B, MAX_NODES, NODE_FEATURES)
    adj = out[:, NODE_FEATURES:NODE_FEATURES + MAX_NODES].reshape(
        B, MAX_NODES, MAX_NODES)
    bond = out[:, C_BOND0:C_BOND0 + MAX_NODES * NUM_BOND_TYPES].reshape(
        B, MAX_NODES, MAX_NODES, NUM_BOND_TYPES)
    return recon, adj, bond


# ---------------------- one-time parameter packing ---------------------------
def pack_params(params):
    """Pack all decoder weights + constant selection/mask/placement matrices
    into a single lane-dense [TOTAL_ROWS, 128] f32 slab (once, outside jit)."""
    (w1, b1, gat_params, wnode, bnode,
     wadj1, wadj2, badj, wbond1, wbond2, bbond) = params
    w1 = np.asarray(w1, np.float32)
    b1 = np.asarray(b1, np.float32)
    wnode = np.asarray(wnode, np.float32)
    bnode = np.asarray(bnode, np.float32)
    wadj1 = np.asarray(wadj1, np.float32)
    wadj2 = np.asarray(wadj2, np.float32)
    badj = np.asarray(badj, np.float32)
    wbond1 = np.asarray(wbond1, np.float32)
    wbond2 = np.asarray(wbond2, np.float32)
    bbond = np.asarray(bbond, np.float32)

    S = np.zeros((TOTAL_ROWS, LANES), np.float32)
    node_of_row = np.arange(BN) % MAX_NODES
    batch_of_row = np.arange(BN) // MAX_NODES

    # --- z_sel machinery + fused first projection [W1_re | Wz0 | Wz1] ---
    for n in range(MAX_NODES):
        S[R_TTILE:R_TTILE + LATENT, n * LATENT:(n + 1) * LATENT] = \
            np.eye(LATENT, dtype=np.float32)
    for r in range(BN):
        n = node_of_row[r]
        S[R_MASKZ + r, n * LATENT:(n + 1) * LATENT] = 1.0
        S[R_B1 + r, 0:HIDDEN] = b1[0, n * HIDDEN:(n + 1) * HIDDEN]
    for n in range(MAX_NODES):
        S[R_WBIG + n * LATENT:R_WBIG + (n + 1) * LATENT, 0:HIDDEN] = \
            w1[:, n * HIDDEN:(n + 1) * HIDDEN]
    for li, (wg, _asrc, _adst, _bg) in enumerate(gat_params):
        wgz = np.asarray(wg, np.float32)[HIDDEN:, :]                  # [L, H]
        for n in range(MAX_NODES):
            S[R_WBIG + n * LATENT:R_WBIG + (n + 1) * LATENT,
              HIDDEN * (1 + li):HIDDEN * (2 + li)] = wgz

    # --- per-layer GAT parameters (att vectors pre-tiled over source lanes) ---
    tileboth = np.zeros((2 * HEADS, 2 * NH), np.float32)
    for c in range(NH):
        tileboth[c % HEADS, c] = 1.0                                  # src half
        tileboth[HEADS + (c % HEADS), NH + c] = 1.0                   # dst half
    for li, (wg, asrc, adst, bg) in enumerate(gat_params):
        wg = np.asarray(wg, np.float32)
        asrc = np.asarray(asrc, np.float32)
        adst = np.asarray(adst, np.float32)
        bg = np.asarray(bg, np.float32)
        a_bd = np.zeros((HIDDEN, 2 * HEADS), np.float32)
        for k in range(HEADS):
            a_bd[k * HEAD_DIM:(k + 1) * HEAD_DIM, k] = asrc[k]
            a_bd[k * HEAD_DIM:(k + 1) * HEAD_DIM, HEADS + k] = adst[k]
        att_w = a_bd @ tileboth                                       # [H, 2*NH]
        base = R_LAYER0 + li * LAYER_STRIDE
        S[base:base + HIDDEN, 0:HIDDEN] = wg[:HIDDEN, :]
        S[base + HIDDEN:base + 2 * HIDDEN, 0:2 * NH] = att_w
        S[base + 2 * HIDDEN, 0:HIDDEN] = bg[0]

    # --- shared attention constants (lane layout: c = src_row*HEADS + head) ---
    src_row = np.arange(NH) // HEADS
    head_of = np.arange(NH) % HEADS
    for r in range(BN):
        S[R_ROWMASK + r, 0:NH] = (src_row == r).astype(np.float32)
        S[R_ONESB + r, 0:BN] = \
            (np.arange(BN) // MAX_NODES == batch_of_row[r]).astype(np.float32)
        S[R_NEGMASK + r, 0:NH] = np.where(
            src_row // MAX_NODES == batch_of_row[r], 0.0, -1e9).astype(np.float32)
    S[R_GSUM:R_GSUM + NH, 0:NH] = \
        (head_of[:, None] == head_of[None, :]).astype(np.float32)
    S[R_STACKJ:R_STACKJ + NH, 0:BN] = \
        (src_row[:, None] == np.arange(BN)[None, :]).astype(np.float32)
    S[R_HEADM:R_HEADM + NH, 0:HIDDEN] = \
        (head_of[:, None] == (np.arange(HIDDEN) // HEAD_DIM)[None, :]).astype(np.float32)

    # --- output-stage weights & constants ---
    S[R_WOUT:R_WOUT + HIDDEN, 0:OUT_COLS] = np.concatenate(
        [wnode, wadj1, wadj2, wbond1, wbond2], axis=1)
    col32 = np.arange(MAX_NODES * NUM_BOND_TYPES)
    j32 = col32 // NUM_BOND_TYPES
    t32 = col32 % NUM_BOND_TYPES
    S[R_TILEJ4:R_TILEJ4 + NUM_BOND_TYPES, 0:MAX_NODES * NUM_BOND_TYPES] = \
        (np.arange(NUM_BOND_TYPES)[:, None] == t32[None, :]).astype(np.float32)
    j8 = np.arange(MAX_NODES)
    for r in range(BN):
        i = node_of_row[r]
        S[R_DIAGJ8 + r, 0:MAX_NODES] = (j8 == i).astype(np.float32)
        S[R_DIAGJ32 + r, 0:MAX_NODES * NUM_BOND_TYPES] = (j32 == i).astype(np.float32)
        S[R_UP8 + r, 0:MAX_NODES] = (i < j8).astype(np.float32)
        S[R_LO8 + r, 0:MAX_NODES] = (i > j8).astype(np.float32)
        S[R_UP32 + r, 0:MAX_NODES * NUM_BOND_TYPES] = (i < j32).astype(np.float32)
        S[R_LO32 + r, 0:MAX_NODES * NUM_BOND_TYPES] = (i > j32).astype(np.float32)
    S[R_PLR:R_PLR + NODE_FEATURES, 0:NODE_FEATURES] = \
        np.eye(NODE_FEATURES, dtype=np.float32)
    S[R_PLA:R_PLA + MAX_NODES, NODE_FEATURES:NODE_FEATURES + MAX_NODES] = \
        np.eye(MAX_NODES, dtype=np.float32)
    S[R_PLB:R_PLB + MAX_NODES * NUM_BOND_TYPES,
      C_BOND0:C_BOND0 + MAX_NODES * NUM_BOND_TYPES] = \
        np.eye(MAX_NODES * NUM_BOND_TYPES, dtype=np.float32)

    S[R_BIAS, 0:NODE_FEATURES] = bnode[0]
    S[R_BIAS, NODE_FEATURES] = badj[0, 0]
    for j in range(MAX_NODES):
        S[R_BIAS, C_BOND0 + j * NUM_BOND_TYPES:
          C_BOND0 + (j + 1) * NUM_BOND_TYPES] = bbond[0]
    return jnp.asarray(S)


# --------------------------- parameter construction --------------------------
def _lora_linear_effective(key, in_dim, out_dim):
    """Deterministic synthetic params; returns (W_eff [in,out], bias [1,out]).

    Eval-mode LoRALinear: y = x @ (W + (alpha/r) * (B @ A)).T + b.
    (PyTorch init zeroes lora_B; here lora_B is small-random so the LoRA path
    is actually exercised — the fusion is exact either way.)"""
    k1, k2, k3, k4 = jax.random.split(key, 4)
    w = jax.random.normal(k1, (in_dim, out_dim), jnp.float32) / np.sqrt(in_dim)
    b = jax.random.normal(k2, (1, out_dim), jnp.float32) * 0.1
    lora_a = jax.random.normal(k3, (LORA_R, in_dim), jnp.float32) / np.sqrt(in_dim)
    lora_b = jax.random.normal(k4, (out_dim, LORA_R), jnp.float32) * 0.1
    w_eff = w + LORA_SCALING * (lora_b @ lora_a).T
    return w_eff, b


def _gat_params(key):
    k1, k2, k3, k4 = jax.random.split(key, 4)
    wg = jax.random.normal(k1, (GAT_IN, HIDDEN), jnp.float32) / np.sqrt(GAT_IN)
    asrc = jax.random.normal(k2, (HEADS, HEAD_DIM), jnp.float32) * 0.3
    adst = jax.random.normal(k3, (HEADS, HEAD_DIM), jnp.float32) * 0.3
    bg = jax.random.normal(k4, (1, HIDDEN), jnp.float32) * 0.1
    return (wg, asrc, adst, bg)


def init_params(key):
    keys = jax.random.split(key, 4 + NUM_DEC_LAYERS)
    w1, b1 = _lora_linear_effective(keys[0], LATENT, HIDDEN * MAX_NODES)
    gat_params = [_gat_params(keys[1 + i]) for i in range(NUM_DEC_LAYERS)]
    wnode, bnode = _lora_linear_effective(keys[1 + NUM_DEC_LAYERS], HIDDEN, NODE_FEATURES)
    wadj, badj = _lora_linear_effective(keys[2 + NUM_DEC_LAYERS], 2 * HIDDEN, 1)
    wbond, bbond = _lora_linear_effective(keys[3 + NUM_DEC_LAYERS], 2 * HIDDEN, NUM_BOND_TYPES)
    wadj1, wadj2 = wadj[:HIDDEN], wadj[HIDDEN:]
    wbond1, wbond2 = wbond[:HIDDEN], wbond[HIDDEN:]
    return (w1, b1, gat_params, wnode, bnode, wadj1, wadj2, badj, wbond1, wbond2, bbond)


# ------------------------- pure-JAX reference (check) -------------------------
def reference_forward(z, params):
    (w1, b1, gat_params, wnode, bnode,
     wadj1, wadj2, badj, wbond1, wbond2, bbond) = params
    flat = jax.nn.relu(z @ w1 + b1)
    x = flat.reshape(B, MAX_NODES, HIDDEN)
    z_rep = jnp.broadcast_to(z[:, None, :], (B, MAX_NODES, LATENT))
    for (wg, asrc, adst, bg) in gat_params:
        x_cat = jnp.concatenate([x, z_rep], axis=-1)
        h = jnp.einsum('bnd,df->bnf', x_cat, wg).reshape(B, MAX_NODES, HEADS, HEAD_DIM)
        s_src = jnp.einsum('bnkd,kd->bnk', h, asrc)
        s_dst = jnp.einsum('bnkd,kd->bnk', h, adst)
        e = s_dst[:, :, None, :] + s_src[:, None, :, :]          # [B, i, j, heads]
        e = jnp.where(e > 0, e, NEG_SLOPE * e)
        attn = jax.nn.softmax(e, axis=2)
        out = jnp.einsum('bijk,bjkd->bikd', attn, h)
        x = jax.nn.relu(out.reshape(B, MAX_NODES, HIDDEN) + bg)
    recon = jnp.einsum('bnh,hf->bnf', x, wnode) + bnode
    adj = jnp.zeros((B, MAX_NODES, MAX_NODES), jnp.float32)
    bond = jnp.zeros((B, MAX_NODES, MAX_NODES, NUM_BOND_TYPES), jnp.float32)
    for i in range(MAX_NODES):
        for j in range(i + 1, MAX_NODES):
            hi, hj = x[:, i, :], x[:, j, :]
            el = (hi @ wadj1 + hj @ wadj2 + badj)[:, 0]
            adj = adj.at[:, i, j].set(el).at[:, j, i].set(el)
            bl = hi @ wbond1 + hj @ wbond2 + bbond
            bond = bond.at[:, i, j, :].set(bl).at[:, j, i, :].set(bl)
    return recon, adj, bond


# ----------------------------------- main ------------------------------------
if __name__ == "__main__":
    key = jax.random.PRNGKey(0)
    kz, kp = jax.random.split(key)
    z = jax.random.normal(kz, (B, LATENT), jnp.float32)
    params = init_params(kp)

    # one-time parameter packing (outside the jitted forward)
    slab = jax.block_until_ready(pack_params(params))

    fwd = jax.jit(mpnn_decoder_forward)
    recon, adj, bond = jax.block_until_ready(fwd(z, slab))

    r_recon, r_adj, r_bond = reference_forward(z, params)
    np.testing.assert_allclose(np.asarray(recon), np.asarray(r_recon), rtol=5e-3, atol=5e-3)
    np.testing.assert_allclose(np.asarray(adj), np.asarray(r_adj), rtol=5e-3, atol=5e-3)
    np.testing.assert_allclose(np.asarray(bond), np.asarray(r_bond), rtol=5e-3, atol=5e-3)

    print("KERNEL_OK")
</pallas_src>

<mosaic_0001>
module attributes {stable_mosaic.version = 11 : i64} {
  func.func @decoder_kernel(%arg0: memref<2x16xf32, #tpu.memory_space<vmem>>, %arg1: memref<752x128xf32, #tpu.memory_space<vmem>>, %arg2: memref<16x128xf32, #tpu.memory_space<vmem>>) attributes {dimension_semantics = [], scalar_prefetch = 0 : i64, scratch_operands = 0 : i64, tpu.core_type = #tpu.core_type<tc>} {
    %c0 = arith.constant 0 : index
    %c0_0 = arith.constant 0 : index
    %0 = vector.load %arg0[%c0, %c0_0] : memref<2x16xf32, #tpu.memory_space<vmem>>, vector<2x16xf32>
    %1 = vector.shape_cast %0 : vector<2x16xf32> to vector<2x1x16xf32>
    %2 = vector.shape_cast %1 : vector<2x1x16xf32> to vector<2x1x16xf32>
    %3 = vector.broadcast %2 : vector<2x1x16xf32> to vector<2x8x16xf32>
    %4 = vector.shape_cast %3 : vector<2x8x16xf32> to vector<16x16xf32>
    %c0_1 = arith.constant 0 : index
    %c0_2 = arith.constant 0 : index
    %5 = vector.load %arg1[%c0_1, %c0_2] : memref<752x128xf32, #tpu.memory_space<vmem>>, vector<16x128xf32>
    %c16 = arith.constant 16 : index
    %c0_3 = arith.constant 0 : index
    %6 = vector.load %arg1[%c16, %c0_3] : memref<752x128xf32, #tpu.memory_space<vmem>>, vector<16x128xf32>
    %cst = arith.constant dense<0.000000e+00> : vector<16x128xf32>
    %7 = tpu.matmul %4, %5, %cst {dimension_numbers = #tpu.dot_dimension_numbers<[1], [0], [0], [1], [0, 0, 1, 1], [], []>} : vector<16x16xf32>, vector<16x128xf32>, vector<16x128xf32> -> vector<16x128xf32>
    %8 = arith.mulf %7, %6 : vector<16x128xf32>
    %c32 = arith.constant 32 : index
    %c0_4 = arith.constant 0 : index
    %9 = vector.load %arg1[%c32, %c0_4] : memref<752x128xf32, #tpu.memory_space<vmem>>, vector<128x96xf32>
    %cst_5 = arith.constant dense<0.000000e+00> : vector<16x96xf32>
    %10 = tpu.matmul %8, %9, %cst_5 {dimension_numbers = #tpu.dot_dimension_numbers<[1], [0], [0], [1], [0, 0, 1, 1], [], []>} : vector<16x128xf32>, vector<128x96xf32>, vector<16x96xf32> -> vector<16x96xf32>
    %c160 = arith.constant 160 : index
    %c0_6 = arith.constant 0 : index
    %11 = vector.load %arg1[%c160, %c0_6] : memref<752x128xf32, #tpu.memory_space<vmem>>, vector<16x32xf32>
    %12 = vector.extract_strided_slice %10 {offsets = [0, 0], sizes = [16, 32], strides = [1, 1]} : vector<16x96xf32> to vector<16x32xf32>
    %13 = arith.addf %12, %11 : vector<16x32xf32>
    %cst_7 = arith.constant 0.000000e+00 : f32
    %14 = vector.broadcast %cst_7 : f32 to vector<16x32xf32>
    %15 = arith.maximumf %13, %14 : vector<16x32xf32>
    %c320 = arith.constant 320 : index
    %c0_8 = arith.constant 0 : index
    %16 = vector.load %arg1[%c320, %c0_8] : memref<752x128xf32, #tpu.memory_space<vmem>>, vector<16x64xf32>
    %c336 = arith.constant 336 : index
    %c0_9 = arith.constant 0 : index
    %17 = vector.load %arg1[%c336, %c0_9] : memref<752x128xf32, #tpu.memory_space<vmem>>, vector<16x16xf32>
    %c352 = arith.constant 352 : index
    %c0_10 = arith.constant 0 : index
    %18 = vector.load %arg1[%c352, %c0_10] : memref<752x128xf32, #tpu.memory_space<vmem>>, vector<16x64xf32>
    %c368 = arith.constant 368 : index
    %c0_11 = arith.constant 0 : index
    %19 = vector.load %arg1[%c368, %c0_11] : memref<752x128xf32, #tpu.memory_space<vmem>>, vector<64x64xf32>
    %c432 = arith.constant 432 : index
    %c0_12 = arith.constant 0 : index
    %20 = vector.load %arg1[%c432, %c0_12] : memref<752x128xf32, #tpu.memory_space<vmem>>, vector<64x16xf32>
    %c496 = arith.constant 496 : index
    %c0_13 = arith.constant 0 : index
    %21 = vector.load %arg1[%c496, %c0_13] : memref<752x128xf32, #tpu.memory_space<vmem>>, vector<64x32xf32>
    %c176 = arith.constant 176 : index
    %c0_14 = arith.constant 0 : index
    %22 = vector.load %arg1[%c176, %c0_14] : memref<752x128xf32, #tpu.memory_space<vmem>>, vector<32x32xf32>
    %c208 = arith.constant 208 : index
    %c0_15 = arith.constant 0 : index
    %23 = vector.load %arg1[%c208, %c0_15] : memref<752x128xf32, #tpu.memory_space<vmem>>, vector<32x128xf32>
    %c240 = arith.constant 240 : index
    %c0_16 = arith.constant 0 : index
    %24 = vector.load %arg1[%c240, %c0_16] : memref<752x128xf32, #tpu.memory_space<vmem>>, vector<1x32xf32>
    %25 = vector.extract_strided_slice %10 {offsets = [0, 32], sizes = [16, 32], strides = [1, 1]} : vector<16x96xf32> to vector<16x32xf32>
    %cst_17 = arith.constant dense<0.000000e+00> : vector<16x32xf32>
    %26 = tpu.matmul %15, %22, %cst_17 {dimension_numbers = #tpu.dot_dimension_numbers<[1], [0], [0], [1], [0, 0, 1, 1], [], []>} : vector<16x32xf32>, vector<32x32xf32>, vector<16x32xf32> -> vector<16x32xf32>
    %27 = arith.addf %26, %25 : vector<16x32xf32>
    %cst_18 = arith.constant dense<0.000000e+00> : vector<16x128xf32>
    %28 = tpu.matmul %27, %23, %cst_18 {dimension_numbers = #tpu.dot_dimension_numbers<[1], [0], [0], [1], [0, 0, 1, 1], [], []>} : vector<16x32xf32>, vector<32x128xf32>, vector<16x128xf32> -> vector<16x128xf32>
    %29 = vector.extract_strided_slice %28 {offsets = [0, 0], sizes = [16, 64], strides = [1, 1]} : vector<16x128xf32> to vector<16x64xf32>
    %30 = vector.extract_strided_slice %28 {offsets = [0, 64], sizes = [16, 64], strides = [1, 1]} : vector<16x128xf32> to vector<16x64xf32>
    %31 = arith.mulf %29, %16 : vector<16x64xf32>
    %cst_19 = arith.constant dense<0.000000e+00> : vector<16x64xf32>
    %32 = tpu.matmul %17, %31, %cst_19 {dimension_numbers = #tpu.dot_dimension_numbers<[1], [0], [0], [1], [0, 0, 1, 1], [], []>} : vector<16x16xf32>, vector<16x64xf32>, vector<16x64xf32> -> vector<16x64xf32>
    %33 = arith.addf %30, %32 : vector<16x64xf32>
    %cst_20 = arith.constant 0.000000e+00 : f32
    %34 = vector.broadcast %cst_20 : f32 to vector<16x64xf32>
    %35 = arith.cmpf ogt, %33, %34 : vector<16x64xf32>
    %cst_21 = arith.constant 2.000000e-01 : f32
    %36 = vector.broadcast %cst_21 : f32 to vector<16x64xf32>
    %37 = arith.mulf %36, %33 : vector<16x64xf32>
    %38 = arith.select %35, %33, %37 : vector<16x64xi1>, vector<16x64xf32>
    %39 = arith.addf %38, %18 : vector<16x64xf32>
    %cst_22 = arith.constant dense<0xFF800000> : vector<16xf32>
    %40 = vector.multi_reduction <maximumf>, %39, %cst_22 [1] : vector<16x64xf32> to vector<16xf32>
    %41 = vector.shape_cast %40 : vector<16xf32> to vector<16x1xf32>
    %42 = vector.broadcast %41 : vector<16x1xf32> to vector<16x64xf32>
    %43 = arith.subf %39, %42 : vector<16x64xf32>
    %44 = math.exp %43 : vector<16x64xf32>
    %cst_23 = arith.constant dense<0.000000e+00> : vector<16x64xf32>
    %45 = tpu.matmul %44, %19, %cst_23 {dimension_numbers = #tpu.dot_dimension_numbers<[1], [0], [0], [1], [0, 0, 1, 1], [], []>} : vector<16x64xf32>, vector<64x64xf32>, vector<16x64xf32> -> vector<16x64xf32>
    %46 = tpu.reciprocal %45 {approx = true} : vector<16x64xf32> -> vector<16x64xf32>
    %47 = arith.mulf %44, %46 : vector<16x64xf32>
    %cst_24 = arith.constant dense<0.000000e+00> : vector<64x32xf32>
    %48 = tpu.matmul %20, %27, %cst_24 {dimension_numbers = #tpu.dot_dimension_numbers<[1], [0], [0], [1], [0, 0, 1, 1], [], []>} : vector<64x16xf32>, vector<16x32xf32>, vector<64x32xf32> -> vector<64x32xf32>
    %49 = arith.mulf %48, %21 : vector<64x32xf32>
    %cst_25 = arith.constant dense<0.000000e+00> : vector<16x32xf32>
    %50 = tpu.matmul %47, %49, %cst_25 {dimension_numbers = #tpu.dot_dimension_numbers<[1], [0], [0], [1], [0, 0, 1, 1], [], []>} : vector<16x64xf32>, vector<64x32xf32>, vector<16x32xf32> -> vector<16x32xf32>
    %51 = vector.broadcast %24 : vector<1x32xf32> to vector<16x32xf32>
    %52 = arith.addf %50, %51 : vector<16x32xf32>
    %cst_26 = arith.constant 0.000000e+00 : f32
    %53 = vector.broadcast %cst_26 : f32 to vector<16x32xf32>
    %54 = arith.maximumf %52, %53 : vector<16x32xf32>
    %c248 = arith.constant 248 : index
    %c0_27 = arith.constant 0 : index
    %55 = vector.load %arg1[%c248, %c0_27] : memref<752x128xf32, #tpu.memory_space<vmem>>, vector<32x32xf32>
    %c280 = arith.constant 280 : index
    %c0_28 = arith.constant 0 : index
    %56 = vector.load %arg1[%c280, %c0_28] : memref<752x128xf32, #tpu.memory_space<vmem>>, vector<32x128xf32>
    %c312 = arith.constant 312 : index
    %c0_29 = arith.constant 0 : index
    %57 = vector.load %arg1[%c312, %c0_29] : memref<752x128xf32, #tpu.memory_space<vmem>>, vector<1x32xf32>
    %58 = vector.extract_strided_slice %10 {offsets = [0, 64], sizes = [16, 32], strides = [1, 1]} : vector<16x96xf32> to vector<16x32xf32>
    %cst_30 = arith.constant dense<0.000000e+00> : vector<16x32xf32>
    %59 = tpu.matmul %54, %55, %cst_30 {dimension_numbers = #tpu.dot_dimension_numbers<[1], [0], [0], [1], [0, 0, 1, 1], [], []>} : vector<16x32xf32>, vector<32x32xf32>, vector<16x32xf32> -> vector<16x32xf32>
    %60 = arith.addf %59, %58 : vector<16x32xf32>
    %cst_31 = arith.constant dense<0.000000e+00> : vector<16x128xf32>
    %61 = tpu.matmul %60, %56, %cst_31 {dimension_numbers = #tpu.dot_dimension_numbers<[1], [0], [0], [1], [0, 0, 1, 1], [], []>} : vector<16x32xf32>, vector<32x128xf32>, vector<16x128xf32> -> vector<16x128xf32>
    %62 = vector.extract_strided_slice %61 {offsets = [0, 0], sizes = [16, 64], strides = [1, 1]} : vector<16x128xf32> to vector<16x64xf32>
    %63 = vector.extract_strided_slice %61 {offsets = [0, 64], sizes = [16, 64], strides = [1, 1]} : vector<16x128xf32> to vector<16x64xf32>
    %64 = arith.mulf %62, %16 : vector<16x64xf32>
    %cst_32 = arith.constant dense<0.000000e+00> : vector<16x64xf32>
    %65 = tpu.matmul %17, %64, %cst_32 {dimension_numbers = #tpu.dot_dimension_numbers<[1], [0], [0], [1], [0, 0, 1, 1], [], []>} : vector<16x16xf32>, vector<16x64xf32>, vector<16x64xf32> -> vector<16x64xf32>
    %66 = arith.addf %63, %65 : vector<16x64xf32>
    %cst_33 = arith.constant 0.000000e+00 : f32
    %67 = vector.broadcast %cst_33 : f32 to vector<16x64xf32>
    %68 = arith.cmpf ogt, %66, %67 : vector<16x64xf32>
    %cst_34 = arith.constant 2.000000e-01 : f32
    %69 = vector.broadcast %cst_34 : f32 to vector<16x64xf32>
    %70 = arith.mulf %69, %66 : vector<16x64xf32>
    %71 = arith.select %68, %66, %70 : vector<16x64xi1>, vector<16x64xf32>
    %72 = arith.addf %71, %18 : vector<16x64xf32>
    %cst_35 = arith.constant dense<0xFF800000> : vector<16xf32>
    %73 = vector.multi_reduction <maximumf>, %72, %cst_35 [1] : vector<16x64xf32> to vector<16xf32>
    %74 = vector.shape_cast %73 : vector<16xf32> to vector<16x1xf32>
    %75 = vector.broadcast %74 : vector<16x1xf32> to vector<16x64xf32>
    %76 = arith.subf %72, %75 : vector<16x64xf32>
    %77 = math.exp %76 : vector<16x64xf32>
    %cst_36 = arith.constant dense<0.000000e+00> : vector<16x64xf32>
    %78 = tpu.matmul %77, %19, %cst_36 {dimension_numbers = #tpu.dot_dimension_numbers<[1], [0], [0], [1], [0, 0, 1, 1], [], []>} : vector<16x64xf32>, vector<64x64xf32>, vector<16x64xf32> -> vector<16x64xf32>
    %79 = tpu.reciprocal %78 {approx = true} : vector<16x64xf32> -> vector<16x64xf32>
    %80 = arith.mulf %77, %79 : vector<16x64xf32>
    %cst_37 = arith.constant dense<0.000000e+00> : vector<64x32xf32>
    %81 = tpu.matmul %20, %60, %cst_37 {dimension_numbers = #tpu.dot_dimension_numbers<[1], [0], [0], [1], [0, 0, 1, 1], [], []>} : vector<64x16xf32>, vector<16x32xf32>, vector<64x32xf32> -> vector<64x32xf32>
    %82 = arith.mulf %81, %21 : vector<64x32xf32>
    %cst_38 = arith.constant dense<0.000000e+00> : vector<16x32xf32>
    %83 = tpu.matmul %80, %82, %cst_38 {dimension_numbers = #tpu.dot_dimension_numbers<[1], [0], [0], [1], [0, 0, 1, 1], [], []>} : vector<16x64xf32>, vector<64x32xf32>, vector<16x32xf32> -> vector<16x32xf32>
    %84 = vector.broadcast %57 : vector<1x32xf32> to vector<16x32xf32>
    %85 = arith.addf %83, %84 : vector<16x32xf32>
    %cst_39 = arith.constant 0.000000e+00 : f32
    %86 = vector.broadcast %cst_39 : f32 to vector<16x32xf32>
    %87 = arith.maximumf %85, %86 : vector<16x32xf32>
    %c560 = arith.constant 560 : index
    %c0_40 = arith.constant 0 : index
    %88 = vector.load %arg1[%c560, %c0_40] : memref<752x128xf32, #tpu.memory_space<vmem>>, vector<32x18xf32>
    %cst_41 = arith.constant dense<0.000000e+00> : vector<16x18xf32>
    %89 = tpu.matmul %87, %88, %cst_41 {dimension_numbers = #tpu.dot_dimension_numbers<[1], [0], [0], [1], [0, 0, 1, 1], [], []>} : vector<16x32xf32>, vector<32x18xf32>, vector<16x18xf32> -> vector<16x18xf32>
    %c744 = arith.constant 744 : index
    %c0_42 = arith.constant 0 : index
    %90 = vector.load %arg1[%c744, %c0_42] : memref<752x128xf32, #tpu.memory_space<vmem>>, vector<1x128xf32>
    %91 = vector.extract_strided_slice %89 {offsets = [0, 0], sizes = [16, 8], strides = [1, 1]} : vector<16x18xf32> to vector<16x8xf32>
    %92 = vector.extract_strided_slice %90 {offsets = [0, 0], sizes = [1, 8], strides = [1, 1]} : vector<1x128xf32> to vector<1x8xf32>
    %93 = vector.broadcast %92 : vector<1x8xf32> to vector<16x8xf32>
    %94 = arith.addf %91, %93 : vector<16x8xf32>
    %c600 = arith.constant 600 : index
    %c0_43 = arith.constant 0 : index
    %95 = vector.load %arg1[%c600, %c0_43] : memref<752x128xf32, #tpu.memory_space<vmem>>, vector<16x8xf32>
    %c616 = arith.constant 616 : index
    %c0_44 = arith.constant 0 : index
    %96 = vector.load %arg1[%c616, %c0_44] : memref<752x128xf32, #tpu.memory_space<vmem>>, vector<16x32xf32>
    %c632 = arith.constant 632 : index
    %c0_45 = arith.constant 0 : index
    %97 = vector.load %arg1[%c632, %c0_45] : memref<752x128xf32, #tpu.memory_space<vmem>>, vector<16x8xf32>
    %c648 = arith.constant 648 : index
    %c0_46 = arith.constant 0 : index
    %98 = vector.load %arg1[%c648, %c0_46] : memref<752x128xf32, #tpu.memory_space<vmem>>, vector<16x8xf32>
    %c664 = arith.constant 664 : index
    %c0_47 = arith.constant 0 : index
    %99 = vector.load %arg1[%c664, %c0_47] : memref<752x128xf32, #tpu.memory_space<vmem>>, vector<16x32xf32>
    %c680 = arith.constant 680 : index
    %c0_48 = arith.constant 0 : index
    %100 = vector.load %arg1[%c680, %c0_48] : memref<752x128xf32, #tpu.memory_space<vmem>>, vector<16x32xf32>
    %c592 = arith.constant 592 : index
    %c0_49 = arith.constant 0 : index
    %101 = vector.load %arg1[%c592, %c0_49] : memref<752x128xf32, #tpu.memory_space<vmem>>, vector<4x32xf32>
    %102 = vector.extract_strided_slice %89 {offsets = [0, 8], sizes = [16, 1], strides = [1, 1]} : vector<16x18xf32> to vector<16x1xf32>
    %103 = vector.extract_strided_slice %89 {offsets = [0, 9], sizes = [16, 1], strides = [1, 1]} : vector<16x18xf32> to vector<16x1xf32>
    %104 = vector.extract_strided_slice %90 {offsets = [0, 8], sizes = [1, 1], strides = [1, 1]} : vector<1x128xf32> to vector<1x1xf32>
    %105 = vector.broadcast %102 : vector<16x1xf32> to vector<16x8xf32>
    %106 = arith.mulf %105, %95 : vector<16x8xf32>
    %cst_50 = arith.constant dense<0.000000e+00> : vector<16x8xf32>
    %107 = tpu.matmul %17, %106, %cst_50 {dimension_numbers = #tpu.dot_dimension_numbers<[1], [0], [0], [1], [0, 0, 1, 1], [], []>} : vector<16x16xf32>, vector<16x8xf32>, vector<16x8xf32> -> vector<16x8xf32>
    %108 = vector.broadcast %103 : vector<16x1xf32> to vector<16x8xf32>
    %109 = arith.mulf %108, %95 : vector<16x8xf32>
    %cst_51 = arith.constant dense<0.000000e+00> : vector<16x8xf32>
    %110 = tpu.matmul %17, %109, %cst_51 {dimension_numbers = #tpu.dot_dimension_numbers<[1], [0], [0], [1], [0, 0, 1, 1], [], []>} : vector<16x16xf32>, vector<16x8xf32>, vector<16x8xf32> -> vector<16x8xf32>
    %111 = vector.broadcast %102 : vector<16x1xf32> to vector<16x8xf32>
    %112 = arith.addf %111, %110 : vector<16x8xf32>
    %113 = vector.broadcast %104 : vector<1x1xf32> to vector<16x8xf32>
    %114 = arith.addf %112, %113 : vector<16x8xf32>
    %115 = vector.broadcast %103 : vector<16x1xf32> to vector<16x8xf32>
    %116 = arith.addf %115, %107 : vector<16x8xf32>
    %117 = vector.broadcast %104 : vector<1x1xf32> to vector<16x8xf32>
    %118 = arith.addf %116, %117 : vector<16x8xf32>
    %119 = arith.mulf %97, %114 : vector<16x8xf32>
    %120 = arith.mulf %98, %118 : vector<16x8xf32>
    %121 = arith.addf %119, %120 : vector<16x8xf32>
    %122 = vector.extract_strided_slice %89 {offsets = [0, 10], sizes = [16, 4], strides = [1, 1]} : vector<16x18xf32> to vector<16x4xf32>
    %123 = vector.extract_strided_slice %89 {offsets = [0, 14], sizes = [16, 4], strides = [1, 1]} : vector<16x18xf32> to vector<16x4xf32>
    %124 = vector.extract_strided_slice %90 {offsets = [0, 16], sizes = [1, 32], strides = [1, 1]} : vector<1x128xf32> to vector<1x32xf32>
    %cst_52 = arith.constant dense<0.000000e+00> : vector<16x32xf32>
    %125 = tpu.matmul %122, %101, %cst_52 {dimension_numbers = #tpu.dot_dimension_numbers<[1], [0], [0], [1], [0, 0, 1, 1], [], []>} : vector<16x4xf32>, vector<4x32xf32>, vector<16x32xf32> -> vector<16x32xf32>
    %cst_53 = arith.constant dense<0.000000e+00> : vector<16x32xf32>
    %126 = tpu.matmul %123, %101, %cst_53 {dimension_numbers = #tpu.dot_dimension_numbers<[1], [0], [0], [1], [0, 0, 1, 1], [], []>} : vector<16x4xf32>, vector<4x32xf32>, vector<16x32xf32> -> vector<16x32xf32>
    %127 = arith.mulf %125, %96 : vector<16x32xf32>
    %cst_54 = arith.constant dense<0.000000e+00> : vector<16x32xf32>
    %128 = tpu.matmul %17, %127, %cst_54 {dimension_numbers = #tpu.dot_dimension_numbers<[1], [0], [0], [1], [0, 0, 1, 1], [], []>} : vector<16x16xf32>, vector<16x32xf32>, vector<16x32xf32> -> vector<16x32xf32>
    %129 = arith.mulf %126, %96 : vector<16x32xf32>
    %cst_55 = arith.constant dense<0.000000e+00> : vector<16x32xf32>
    %130 = tpu.matmul %17, %129, %cst_55 {dimension_numbers = #tpu.dot_dimension_numbers<[1], [0], [0], [1], [0, 0, 1, 1], [], []>} : vector<16x16xf32>, vector<16x32xf32>, vector<16x32xf32> -> vector<16x32xf32>
    %131 = arith.addf %125, %130 : vector<16x32xf32>
    %132 = vector.broadcast %124 : vector<1x32xf32> to vector<16x32xf32>
    %133 = arith.addf %131, %132 : vector<16x32xf32>
    %134 = arith.addf %126, %128 : vector<16x32xf32>
    %135 = vector.broadcast %124 : vector<1x32xf32> to vector<16x32xf32>
    %136 = arith.addf %134, %135 : vector<16x32xf32>
    %137 = arith.mulf %99, %133 : vector<16x32xf32>
    %138 = arith.mulf %100, %136 : vector<16x32xf32>
    %139 = arith.addf %137, %138 : vector<16x32xf32>
    %c696 = arith.constant 696 : index
    %c0_56 = arith.constant 0 : index
    %140 = vector.load %arg1[%c696, %c0_56] : memref<752x128xf32, #tpu.memory_space<vmem>>, vector<8x128xf32>
    %c704 = arith.constant 704 : index
    %c0_57 = arith.constant 0 : index
    %141 = vector.load %arg1[%c704, %c0_57] : memref<752x128xf32, #tpu.memory_space<vmem>>, vector<8x128xf32>
    %c712 = arith.constant 712 : index
    %c0_58 = arith.constant 0 : index
    %142 = vector.load %arg1[%c712, %c0_58] : memref<752x128xf32, #tpu.memory_space<vmem>>, vector<32x128xf32>
    %cst_59 = arith.constant dense<0.000000e+00> : vector<16x128xf32>
    %143 = tpu.matmul %94, %140, %cst_59 {dimension_numbers = #tpu.dot_dimension_numbers<[1], [0], [0], [1], [0, 0, 1, 1], [], []>} : vector<16x8xf32>, vector<8x128xf32>, vector<16x128xf32> -> vector<16x128xf32>
    %cst_60 = arith.constant dense<0.000000e+00> : vector<16x128xf32>
    %144 = tpu.matmul %121, %141, %cst_60 {dimension_numbers = #tpu.dot_dimension_numbers<[1], [0], [0], [1], [0, 0, 1, 1], [], []>} : vector<16x8xf32>, vector<8x128xf32>, vector<16x128xf32> -> vector<16x128xf32>
    %145 = arith.addf %143, %144 : vector<16x128xf32>
    %cst_61 = arith.constant dense<0.000000e+00> : vector<16x128xf32>
    %146 = tpu.matmul %139, %142, %cst_61 {dimension_numbers = #tpu.dot_dimension_numbers<[1], [0], [0], [1], [0, 0, 1, 1], [], []>} : vector<16x32xf32>, vector<32x128xf32>, vector<16x128xf32> -> vector<16x128xf32>
    %147 = arith.addf %145, %146 : vector<16x128xf32>
    %c0_62 = arith.constant 0 : index
    %c0_63 = arith.constant 0 : index
    %148 = vector.load %arg2[%c0_62, %c0_63] : memref<16x128xf32, #tpu.memory_space<vmem>>, vector<16x128xf32>
    tpu.vector_store %arg2[%c0_62, %c0_63], %147 {strides = array<i32>} : memref<16x128xf32, #tpu.memory_space<vmem>>, vector<16x128xf32>,
    return
  }
}

</mosaic_0001>

<bundles_post_ra>
// kernel: mpnn_decoder_forward.1
= control target key start
LH: loop header
LB: loop body
LE: loop exit
PB: predicated region body
PF: predicated region fallthrough
CT: control target
= control target key end

     0   :  { %7 = vsyncpa [#allocation3], 0  ;;  %s1522_s0 = inlined_call_operand.hbm [shape: f32[2,16], index: 0, kind: input, shape index: {}]   ;;  %s1523_s1 = inlined_call_operand.hbm [shape: f32[752,128], index: 1, kind: input, shape index: {}]   ;;  %s1524_s2 = inlined_call_operand.vmem [shape: f32[16,128], index: 2, kind: output, shape index: {}]  }
   0x1   :  { %s14_s11 = sshll.u32 %s1522_s0, 4  ;;  %s15_s11 = int_to_ptr.hbm [resolvable:$true] %s14_s11 }
   0x2   :  { %8 = vsyncpa [#allocation5], 0  ;;  %s1240_s12 = smov [#allocation2]   ;;  %s24_s16 = sshll.u32 %s1523_s1, 4  ;;  %s25_s16 = int_to_ptr.hbm [resolvable:$true] %s24_s16 }
   0x3   :  { %s16_s13 = sshll.u32 %s1240_s12, 4  ;;  %s1241_s17 = smov [#allocation4]   ;;  %s17_s13 = int_to_ptr.vmem [resolvable:$true] %s16_s13 }
   0x4   :  { %19 = dma.hbm_to_vmem [thread:$0]  %s15_s11, 32, %s17_s13, [#allocation3]  }
   0x5   :  { %s26_s18 = sshll.u32 %s1241_s17, 4  ;;  %s1242_s19 = smov 128   ;;  %s27_s18 = int_to_ptr.vmem [resolvable:$true] %s26_s18 }
   0x6   :  { %s1243_s20 = smov 8  }
   0x7   :  { %32 = dma.hbm_to_vmem [thread:$0]  %s25_s16, 12032, %s27_s18, [#allocation5], %s1242_s19, %s1242_s19, %s1243_s20  }
   0x8   :  { %1236 = dma.done.wait [#allocation3], 32  }
   0x9   :  { %1237 = vsyncadd [#allocation3], 4294967264 }
   0xa   :  { %1238 = dma.done.wait [#allocation5], 12032  }
   0xb   :  { %1239 = vsyncadd [#allocation5], 4294955264  ;;  %v47_v0 = vld [vmem:[#allocation4 + $0x8] sm:$0xff]  ;;  %v46_v1 = vld [vmem:[#allocation4] sm:$0xff]  ;;  %vm50_vm0 = vcmask 130048   ;;  %s1244_s0 = smov 96  }
   0xc   :  { %v41_v2 = vld [vmem:[#allocation2] sm:$0x3]  ;;  %69 = vmatpush.msra.mxu0 %v47_v0  ;;  %v94_v5 = vld [vmem:[#allocation4 + $0x90] sm:$0xff]  ;;  %v93_v6 = vld [vmem:[#allocation4 + $0x88] sm:$0xff]  ;;  %vm172_vm1 = vcmask 261120   ;;  %s1245_s1 = smov 64  }
   0xd   :  { %v44_v3 = vperm.slane %v41_v2, 0  ;;  %v95_v4 = vld [vmem:[#allocation4 + $0x98] sm:$0xff]  ;;  %v43_v7 = vrot.slane %v41_v2, 1  ;;  %v92_v8 = vld [vmem:[#allocation4 + $0x80] sm:$0xff]  ;;  %v90_v11 = vld [vmem:[#allocation4 + $0x70] sm:$0xff]  ;;  %vm288_vm3 = vcmask 1048064  }
   0xe   :  { %96 = vmatpush.msra.mxu1 %v95_v4  ;;  %70 = vmatpush.msra.mxu0 %v46_v1  ;;  %v91_v9 = vld [vmem:[#allocation4 + $0x78] sm:$0xff]  ;;  %v89_v12 = vld [vmem:[#allocation4 + $0x68] sm:$0xff]  ;;  %v88_v13 = vld [vmem:[#allocation4 + $0x60] sm:$0xff]  ;;  %vm307_vm5 = vcmask 523264   ;;  %vm861_vm8 = vcmask 1043456   ;;  %s1248_s21 = smov 118  }
   0xf   :  { %1091 = vmatmul.msk.f32.vlgmr.msra.gmra.mxu0 %vm50_vm0, %v44_v3  ;;  %v45_v10 = vperm.slane %v43_v7, 0  ;;  %v87_v14 = vld [vmem:[#allocation4 + $0x58] sm:$0xff]  ;;  %v86_v15 = vld [vmem:[#allocation4 + $0x50] sm:$0xff]  ;;  %v85_v16 = vld [vmem:[#allocation4 + $0x48] sm:$0xff]  ;;  %s1249_s22 = smov 114   ;;  %s1250_s23 = smov 120  }
  0x10   :  { %97 = vmatpush.msra.mxu1 %v94_v5  ;;  %v84_v17 = vld [vmem:[#allocation4 + $0x40] sm:$0xff]  ;;  %v83_v18 = vld [vmem:[#allocation4 + $0x38] sm:$0xff]  ;;  %v82_v19 = vld [vmem:[#allocation4 + $0x30] sm:$0xff]  ;;  %vm856_vm9 = vcmask 31744   ;;  %s1251_s24 = smov 112   ;;  %vm993_vm10 = vcmask 64512  }
  0x11   :  { %v81_v20 = vld [vmem:[#allocation4 + $0x28] sm:$0xff]  ;;  %v80_v21 = vld [vmem:[#allocation4 + $0x20] sm:$0xff]  ;;  %v48_v23 = vld [vmem:[#allocation4 + $0x10] sm:$0xff] }
  0x12   :  { %98 = vmatpush.msra.mxu1 %v93_v6  ;;  %v158_v22 = vld [vmem:[#allocation4 + $0xc8] sm:$0xff]  ;;  %v49_v26 = vld [vmem:[#allocation4 + $0x18] sm:$0xff]  ;;  %v157_v29 = vld [vmem:[#allocation4 + $0xc0] sm:$0xff] }
  0x13   :  { %191 = vmatpush.msra.mxu2 %v158_v22  ;;  %v156_v30 = vld [vmem:[#allocation4 + $0xb8] sm:$0xff]  ;;  %v155_v31 = vld [vmem:[#allocation4 + $0xb0] sm:$0xff]  ;;  %v119_v32 = vld [vmem:[#allocation4 + $0xa0] sm:$0xff] }
  0x14   :  { %99 = vmatpush.msra.mxu1 %v92_v8  ;;  %v120_v36 = vld [vmem:[#allocation4 + $0xa8] sm:$0xff]  ;;  %v161_v41 = vld [vmem:[#allocation4 + $0xe0] sm:$0xff]  ;;  %v160_v42 = vld [vmem:[#allocation4 + $0xd8] sm:$0xff] }
  0x15   :  { %192 = vmatpush.msra.mxu2 %v157_v29  ;;  %v162_v40 = vld [vmem:[#allocation4 + $0xe8] sm:$0xff]  ;;  %v159_v43 = vld [vmem:[#allocation4 + $0xd0] sm:$0xff]  ;;  %v1285_v53 = vld [vmem:[#allocation4 + $0x140] sm:$0xff] }
  0x16   :  { %100 = vmatpush.msra.mxu1 %v91_v9  ;;  %220 = vmatpush.msra.mxu3 %v162_v40  ;;  %v1283_v51 = vld [vmem:[#allocation4 + $0x148] sm:$0xff]  ;;  %v1289_v56 = vld [vmem:[#allocation4 + $0x150] sm:$0xff]  ;;  %v1293_v57 = vld [vmem:[#allocation4 + $0x158] sm:$0xff] }
  0x17   :  { %1092 = vmatmul.msk.f32.gmra.mxu0 %vm50_vm0, %v45_v10  ;;  %193 = vmatpush.msra.mxu2 %v156_v30  ;;  %v129_v59 = vld [vmem:[#allocation4 + $0x160] sm:$0xff]  ;;  %v130_v61 = vld [vmem:[#allocation4 + $0x168] sm:$0xff]  ;;  %v1348_v29 = vld [vmem:[#allocation4 + $0x1b8] sm:$0xff] }
  0x18   :  { %101 = vmatpush.msra.mxu1 %v90_v11  ;;  %221 = vmatpush.msra.mxu3 %v161_v41  ;;  %v1352_v30 = vld [vmem:[#allocation4 + $0x1c0] sm:$0xff] }
  0x19   :  { %194 = vmatpush.msra.mxu2 %v155_v31  ;;  %v1356_v31 = vld [vmem:[#allocation4 + $0x1c8] sm:$0xff] }
  0x1a   :  { %102 = vmatpush.msra.mxu1 %v89_v12  ;;  %222 = vmatpush.msra.mxu3 %v160_v42  ;;  %v1312_v12 = vld [vmem:[#allocation4 + $0x1a8] sm:$0xff] }
  0x1b   :  { %320 = vmatpush.msrb.mxu2 %v1312_v12 }
  0x1c   :  { %103 = vmatpush.msra.mxu1 %v88_v13  ;;  %223 = vmatpush.msra.mxu3 %v159_v43  ;;  %v1314_v13 = vld [vmem:[#allocation4 + $0x1a0] sm:$0xff] }
  0x1d   :  { %321 = vmatpush.msrb.mxu2 %v1314_v13 }
  0x1e   :  { %104 = vmatpush.msra.mxu1 %v87_v14  ;;  %v1317_v14 = vld [vmem:[#allocation4 + $0x198] sm:$0xff] }
  0x1f   :  { %322 = vmatpush.msrb.mxu2 %v1317_v14 }
  0x20   :  { %105 = vmatpush.msra.mxu1 %v86_v15  ;;  %v1320_v15 = vld [vmem:[#allocation4 + $0x190] sm:$0xff] }
  0x21   :  { %323 = vmatpush.msrb.mxu2 %v1320_v15 }
  0x22   :  { %106 = vmatpush.msra.mxu1 %v85_v16  ;;  %v1323_v16 = vld [vmem:[#allocation4 + $0x188] sm:$0xff] }
  0x23   :  { %324 = vmatpush.msrb.mxu2 %v1323_v16 }
  0x24   :  { %107 = vmatpush.msra.mxu1 %v84_v17  ;;  %v1326_v17 = vld [vmem:[#allocation4 + $0x180] sm:$0xff] }
  0x25   :  { %325 = vmatpush.msrb.mxu2 %v1326_v17 }
  0x26   :  { %108 = vmatpush.msra.mxu1 %v83_v18  ;;  %v1329_v18 = vld [vmem:[#allocation4 + $0x178] sm:$0xff] }
  0x27   :  { %326 = vmatpush.msrb.mxu2 %v1329_v18 }
  0x28   :  { %109 = vmatpush.msra.mxu1 %v82_v19 }
  0x2a   :  { %110 = vmatpush.msra.mxu1 %v81_v20  ;;  %v1332_v20 = vld [vmem:[#allocation4 + $0x170] sm:$0xff] }
  0x2b   :  { %327 = vmatpush.msrb.mxu2 %v1332_v20 }
  0x2c   :  { %111 = vmatpush.msra.mxu1 %v80_v21 }
  0x8c   :  { %v72_v24 = vpop.f32.mrf.mxu0 }
  0x8d   :  { %v78_v25 = vmul.f32 %v72_v24, %v48_v23 }
  0x8f   :  { %112 = vmatmul.f32.vlgmr.msra.gmra.mxu1 %v78_v25 }
  0x94   :  { %v75_v27 = vpop.f32.mrf.mxu0 }
  0x95   :  { %v79_v28 = vmul.f32 %v75_v27, %v49_v26 }
  0x97   :  { %115 = vmatmul.f32.gmra.mxu1 %v79_v28  ;;  %v1344_v28 = vld [vmem:[#allocation4 + $0x1b0] sm:$0xff] }
 0x10c   :  { %v1275_v33 = vpop.f32.mrf.mxu1 }
 0x10d   :  { %v121_v34 = vadd.f32 %v119_v32, %v1275_v33  ;;  %166 = vrot.lane.b32.xlu0 %v1275_v33, %s1244_s0 }
 0x10f   :  { %v123_v35 = vmax.f32 %v121_v34, 0.0 }
 0x111   :  { %1093 = vmatmul.msk.f32.vlgmr.msra.gmra.mxu2 %vm172_vm1, %v123_v35  ;;  %v1366_v35 = vld [vmem:[#allocation4 + $0x1d8] sm:$0xff] }
 0x114   :  { %v116_v37 = vpop.f32.mrf.mxu1 }
 0x115   :  { %v122_v38 = vadd.f32 %v120_v36, %v116_v37  ;;  %168 = vrot.lane.b32.xlu0 %v116_v37, %s1244_s0  ;;  %v1370_v36 = vld [vmem:[#allocation4 + $0x1e0] sm:$0xff] }
 0x117   :  { %v124_v39 = vmax.f32 %v122_v38, 0.0 }
 0x119   :  { %1094 = vmatmul.msk.f32.gmra.mxu2 %vm172_vm1, %v124_v39 }
 0x17f   :  { %v167_v44 = vpop.permute.xlu0 %166 }
 0x187   :  { %v169_v47 = vpop.permute.xlu0 %168 }
 0x194   :  { %v196_v45 = vpop.f32.mrf.mxu2 }
 0x195   :  { %v197_v46 = vadd.f32 %v196_v45, %v167_v44 }
 0x197   :  { %1095 = vmatmul.msk.f32.vlgmr.msra.gmra.mxu3 %vm172_vm1, %v197_v46 }
 0x19c   :  { %v199_v48 = vpop.f32.mrf.mxu2 }
 0x19d   :  { %v200_v49 = vadd.f32 %v199_v48, %v169_v47 }
 0x19f   :  { %1096 = vmatmul.msk.f32.gmra.mxu3 %vm172_vm1, %v200_v49 }
 0x1a0   :  { %385 = vmatpush.msrb.mxu3 %v200_v49  ;;  %v1380_v49 = vld [vmem:[#allocation4 + $0x220] sm:$0xff] }
 0x1a2   :  { %386 = vmatpush.msrb.mxu3 %v197_v46 }
 0x1a7   :  { %1101 = vmatmul.msk.f32.vlgmr.msrb.gmra.mxu3 %vm50_vm0, %v1344_v28 }
 0x1af   :  { %1102 = vmatmul.msk.f32.gmra.mxu3 %vm50_vm0, %v1348_v29 }
 0x1b7   :  { %1103 = vmatmul.msk.f32.gmra.mxu3 %vm50_vm0, %v1352_v30 }
 0x1bf   :  { %1104 = vmatmul.msk.f32.gmra.mxu3 %vm50_vm0, %v1356_v31 }
 0x21a   :  { %v225_v50 = vpop.f32.mrf.mxu3 }
 0x21b   :  { %v231_v55 = vmul.f32 %v225_v50, %v1285_v53 }
 0x222   :  { %v228_v52 = vpop.f32.mrf.mxu3 }
 0x223   :  { %v232_v54 = vmul.f32 %v228_v52, %v1283_v51 }
 0x225   :  { %253 = vmatpush.msrb.mxu0 %v232_v54 }
 0x227   :  { %254 = vmatpush.msrb.mxu0 %v231_v55 }
 0x228   :  { %1097 = vmatmul.msk.f32.vlgmr.msrb.gmra.mxu0 %vm50_vm0, %v1289_v56 }
 0x22a   :  { %v388_v38 = vpop.f32.mrf.mxu3 }
 0x230   :  { %1098 = vmatmul.msk.f32.gmra.mxu0 %vm50_vm0, %v1293_v57 }
 0x232   :  { %v391_v42 = vpop.f32.mrf.mxu3 }
 0x23a   :  { %v394_v44 = vpop.f32.mrf.mxu3 }
 0x242   :  { %v397_v45 = vpop.f32.mrf.mxu3 }
 0x2a5   :  { %v256_v58 = vpop.f32.mrf.mxu0 }
 0x2a6   :  { %264 = vrot.lane.b32.xlu1 %v256_v58, %s1245_s1 }
 0x2ad   :  { %v259_v60 = vpop.f32.mrf.mxu0 }
 0x2ae   :  { %280 = vrot.lane.b32.xlu1 %v129_v59, %s1245_s1  ;;  %266 = vrot.lane.b32.xlu2 %v259_v60, %s1245_s1  ;;  %v1388_v59 = vld [vmem:[#allocation4 + $0x210] sm:$0xff] }
 0x2b6   :  { %282 = vrot.lane.b32.xlu2 %v130_v61, %s1245_s1  ;;  %v1391_v61 = vld [vmem:[#allocation4 + $0x208] sm:$0xff] }
 0x308   :  { %v267_v62 = vpop.permute.xlu2 %266 }
 0x309   :  { %v271_v63 = vadd.f32 %v267_v62, %v228_v52  ;;  %v1384_v52 = vld [vmem:[#allocation4 + $0x228] sm:$0xff] }
 0x30b   :  { %v275_v0 = vmul.f32 0.2, %v271_v63  ;;  %vm273_vm2 = vcmp.gt.f32.partialorder %v271_v63, 0.0 }
 0x30d   :  { %v277_v1 = vsel %vm273_vm2, %v271_v63, %v275_v0  ;;  %v1394_v63 = vld [vmem:[#allocation4 + $0x200] sm:$0xff]  ;;  %v415_v0 = vmul.f32 %v397_v45, %v1391_v61 }
 0x310   :  { %v1301_v2 = vpop.permute.xlu2 %282 }
 0x311   :  { %v287_v3 = vadd.f32 %v1301_v2, %v277_v1  ;;  %v1397_v1 = vld [vmem:[#allocation4 + $0x1f8] sm:$0xff] }
 0x313   :  { %v292_v4 = vsel %vm288_vm3, %v287_v3, -inf }
 0x314   :  { %293 = vmax.xlane.f32.xlu1 %v292_v4  ;;  %v1400_v4 = vld [vmem:[#allocation4 + $0x1f0] sm:$0xff] }
 0x318   :  { %v265_v5 = vpop.permute.xlu1 %264 }
 0x319   :  { %v270_v6 = vadd.f32 %v265_v5, %v225_v50  ;;  %v1382_v50 = vld [vmem:[#allocation4 + $0x218] sm:$0xff]  ;;  %v413_v5 = vmul.f32 %v391_v42, %v1397_v1 }
 0x31b   :  { %v274_v7 = vmul.f32 0.2, %v270_v6  ;;  %vm272_vm4 = vcmp.gt.f32.partialorder %v270_v6, 0.0 }
 0x31d   :  { %v276_v8 = vsel %vm272_vm4, %v270_v6, %v274_v7  ;;  %v412_v6 = vmul.f32 %v388_v38, %v1400_v4 }
 0x320   :  { %v1305_v9 = vpop.permute.xlu1 %280 }
 0x321   :  { %v286_v10 = vadd.f32 %v1305_v9, %v276_v8 }
 0x323   :  { %v289_v11 = vsel %vm288_vm3, %v286_v10, -inf }
 0x324   :  { %290 = vmax.xlane.f32.xlu0 %v289_v11 }
 0x32d   :  { %467 = vrot.lane.b32.xlu1 %v116_v37, %s1245_s1  ;;  %v1374_v37 = vld [vmem:[#allocation4 + $0x1e8] sm:$0xff] }
 0x338   :  { %465 = vrot.lane.b32.xlu0 %v1275_v33, %s1245_s1  ;;  %v1361_v33 = vld [vmem:[#allocation4 + $0x1d0] sm:$0xff] }
 0x339   :  { %1105 = vmatmul.msk.f32.gmra.mxu3 %vm50_vm0, %v1361_v33 }
 0x341   :  { %1106 = vmatmul.msk.f32.gmra.mxu3 %vm50_vm0, %v1366_v35 }
 0x349   :  { %1107 = vmatmul.msk.f32.gmra.mxu3 %vm50_vm0, %v1370_v36 }
 0x351   :  { %1108 = vmatmul.msk.f32.gmra.mxu3 %vm50_vm0, %v1374_v37 }
 0x387   :  { %v294_v22 = vpop.xlane.xlu1 %293 }
 0x388   :  { %v296_v24 = vsub.f32 %v287_v3, %v294_v22  ;;  %v414_v3 = vmul.f32 %v394_v44, %v1394_v63 }
 0x38a   :  { %v299_v25 = vmul.f32 1.442695, %v296_v24  ;;  %v457_v24 = vld [vmem:[#allocation4 + $0x100] sm:$0xff] }
 0x397   :  { %v291_v19 = vpop.xlane.xlu0 %290 }
 0x398   :  { %v295_v21 = vsub.f32 %v286_v10, %v291_v19  ;;  %v459_v19 = vld [vmem:[#allocation4 + $0x110] sm:$0xff] }
 0x399   :  { %489 = vmatpush.msra.mxu2 %v459_v19 }
 0x39a   :  { %v297_v23 = vmul.f32 1.442695, %v295_v21 }
 0x39c   :  { %1172 = vpow2.f32 %v297_v23  ;;  %v458_v23 = vld [vmem:[#allocation4 + $0x108] sm:$0xff] }
 0x39d   :  { %1174 = vpow2.f32 %v299_v25  ;;  %490 = vmatpush.msra.mxu2 %v458_v23  ;;  %v456_v25 = vld [vmem:[#allocation4 + $0xf8] sm:$0xff] }
 0x39f   :  { %491 = vmatpush.msra.mxu2 %v457_v24 }
 0x3a1   :  { %492 = vmatpush.msra.mxu2 %v456_v25 }
 0x3a2   :  { %v1336_v26 = vpop.eup %1172 }
 0x3a3   :  { %303 = vrot.lane.b32.xlu2 %v1336_v26, %s1245_s1  ;;  %v1340_v27 = vpop.eup %1174 }
 0x3ab   :  { %305 = vrot.lane.b32.xlu2 %v1340_v27, %s1245_s1 }
 0x3bc   :  { %v400_v46 = vpop.f32.mrf.mxu3 }
 0x3bd   :  { %v416_v62 = vmul.f32 %v400_v46, %v1388_v59 }
 0x3c4   :  { %v403_v47 = vpop.f32.mrf.mxu3 }
 0x3c5   :  { %v417_v60 = vmul.f32 %v403_v47, %v1382_v50 }
 0x3cc   :  { %v406_v48 = vpop.f32.mrf.mxu3 }
 0x3cd   :  { %v418_v55 = vmul.f32 %v406_v48, %v1380_v49 }
 0x3d4   :  { %v409_v54 = vpop.f32.mrf.mxu3 }
 0x3d5   :  { %v419_v58 = vmul.f32 %v409_v54, %v1384_v52 }
 0x3d7   :  { %439 = vmatpush.msra.mxu0 %v419_v58 }
 0x3d9   :  { %440 = vmatpush.msra.mxu0 %v418_v55 }
 0x3db   :  { %441 = vmatpush.msra.mxu0 %v417_v60 }
 0x3dd   :  { %442 = vmatpush.msra.mxu0 %v416_v62 }
 0x3df   :  { %443 = vmatpush.msra.mxu0 %v415_v0 }
 0x3e1   :  { %444 = vmatpush.msra.mxu0 %v414_v3 }
 0x3e3   :  { %445 = vmatpush.msra.mxu0 %v413_v5 }
 0x3e5   :  { %446 = vmatpush.msra.mxu0 %v412_v6 }
 0x3fd   :  { %v304_v32 = vpop.permute.xlu2 %303 }
 0x3fe   :  { %1099 = vmatmul.msk.f32.vlgmr.msrb.gmra.mxu2 %vm307_vm5, %v304_v32  ;;  %v1169_v32 = vld [vmem:[#allocation4 + $0xf0] ss:$0 sm:$0xff] }
 0x3ff   :  { %602 = vmatpush.msrb.mxu2 %v1312_v12 }
 0x401   :  { %603 = vmatpush.msrb.mxu2 %v1314_v13 }
 0x403   :  { %604 = vmatpush.msrb.mxu2 %v1317_v14 }
 0x405   :  { %v306_v34 = vpop.permute.xlu2 %305  ;;  %605 = vmatpush.msrb.mxu2 %v1320_v15 }
 0x406   :  { %1100 = vmatmul.msk.f32.gmra.mxu2 %vm307_vm5, %v306_v34 }
 0x407   :  { %606 = vmatpush.msrb.mxu2 %v1323_v16  ;;  %v460_v16 = vld [vmem:[#allocation4 + $0x118] sm:$0xff] }
 0x409   :  { %607 = vmatpush.msrb.mxu2 %v1326_v17  ;;  %v466_v17 = vpop.permute.xlu0 %465 }
 0x40b   :  { %608 = vmatpush.msrb.mxu2 %v1329_v18 }
 0x40d   :  { %609 = vmatpush.msrb.mxu2 %v1332_v20  ;;  %v468_v20 = vpop.permute.xlu1 %467 }
 0x481   :  { %v329_v39 = vpop.f32.mrf.mxu2 }
 0x482   :  { %1176 = vrcp.f32 %v329_v39  ;;  %v461_v39 = vld [vmem:[#allocation4 + $0x120] sm:$0xff] }
 0x488   :  { %v1177_v40 = vpop.eup %1176 }
 0x489   :  { %339 = vrot.lane.b32.xlu2 %v1177_v40, %s1245_s1  ;;  %v332_v41 = vpop.f32.mrf.mxu2 }
 0x48a   :  { %1178 = vrcp.f32 %v332_v41 }
 0x490   :  { %v1179_v43 = vpop.eup %1178 }
 0x491   :  { %341 = vrot.lane.b32.xlu2 %v1179_v43, %s1245_s1 }
 0x4e3   :  { %v340_v7 = vpop.permute.xlu2 %339 }
 0x4e4   :  { %v345_v8 = vmul.f32 %v1336_v26, %v340_v7  ;;  %v463_v26 = vld [vmem:[#allocation4 + $0x130] sm:$0xff] }
 0x4e5   :  { %518 = vmatpush.msrb.mxu1 %v463_v26 }
 0x4e6   :  { %423 = vrot.lane.b32.xlu2 %v345_v8, %s1245_s1 }
 0x4eb   :  { %v342_v10 = vpop.permute.xlu2 %341 }
 0x4ec   :  { %v346_v11 = vmul.f32 %v1340_v27, %v342_v10  ;;  %v462_v27 = vld [vmem:[#allocation4 + $0x128] sm:$0xff] }
 0x4ed   :  { %519 = vmatpush.msrb.mxu1 %v462_v27 }
 0x4ee   :  { %425 = vrot.lane.b32.xlu2 %v346_v11, %s1245_s1 }
 0x4ef   :  { %520 = vmatpush.msrb.mxu1 %v461_v39 }
 0x4f1   :  { %521 = vmatpush.msrb.mxu1 %v460_v16 }
 0x540   :  { %v424_v21 = vpop.permute.xlu2 %423 }
 0x541   :  { %1109 = vmatmul.msk.f32.vlgmr.msra.gmra.mxu0 %vm307_vm5, %v424_v21 }
 0x548   :  { %v426_v22 = vpop.permute.xlu2 %425 }
 0x549   :  { %1110 = vmatmul.msk.f32.gmra.mxu0 %vm307_vm5, %v426_v22 }
 0x5be   :  { %v448_v12 = vpop.f32.mrf.mxu0 }
 0x5bf   :  { %v449_v34 = vadd.f32 %v1169_v32, %v448_v12 }
 0x5c1   :  { %v454_v13 = vmax.f32 %v449_v34, 0.0 }
 0x5c3   :  { %1111 = vmatmul.msk.f32.vlgmr.msra.gmra.mxu2 %vm172_vm1, %v454_v13 }
 0x5c6   :  { %v451_v14 = vpop.f32.mrf.mxu0 }
 0x5c7   :  { %v452_v15 = vadd.f32 %v1169_v32, %v451_v14 }
 0x5c9   :  { %v455_v38 = vmax.f32 %v452_v15, 0.0 }
 0x5cb   :  { %1112 = vmatmul.msk.f32.gmra.mxu2 %vm172_vm1, %v455_v38 }
 0x646   :  { %v494_v40 = vpop.f32.mrf.mxu2 }
 0x647   :  { %v495_v18 = vadd.f32 %v494_v40, %v466_v17 }
 0x649   :  { %1113 = vmatmul.msk.f32.vlgmr.msrb.gmra.mxu1 %vm172_vm1, %v495_v18 }
 0x64e   :  { %v497_v41 = vpop.f32.mrf.mxu2 }
 0x64f   :  { %v498_v42 = vadd.f32 %v497_v41, %v468_v20  ;;  %v1170_v20 = vld [vmem:[#allocation4 + $0x138] ss:$0 sm:$0xff] }
 0x651   :  { %1114 = vmatmul.msk.f32.gmra.mxu1 %vm172_vm1, %v498_v42 }
 0x652   :  { %643 = vmatpush.msra.mxu1 %v498_v42 }
 0x654   :  { %644 = vmatpush.msra.mxu1 %v495_v18  ;;  %v1246_v18 = vmov 8  }
 0x655   :  { %1166 = vset.pattern.permute.xlu1 %v1246_v18  ;;  %1165 = vset.pattern.permute.xlu2 %v1246_v18 }
 0x659   :  { %1119 = vmatmul.msk.f32.vlgmr.msra.gmra.mxu1 %vm50_vm0, %v1344_v28 }
 0x661   :  { %1120 = vmatmul.msk.f32.gmra.mxu1 %vm50_vm0, %v1348_v29 }
 0x669   :  { %1121 = vmatmul.msk.f32.gmra.mxu1 %vm50_vm0, %v1352_v30 }
 0x671   :  { %1122 = vmatmul.msk.f32.gmra.mxu1 %vm50_vm0, %v1356_v31 }
 0x679   :  { %1123 = vmatmul.msk.f32.gmra.mxu1 %vm50_vm0, %v1361_v33 }
 0x681   :  { %1124 = vmatmul.msk.f32.gmra.mxu1 %vm50_vm0, %v1366_v35 }
 0x689   :  { %1125 = vmatmul.msk.f32.gmra.mxu1 %vm50_vm0, %v1370_v36 }
 0x691   :  { %1126 = vmatmul.msk.f32.gmra.mxu1 %vm50_vm0, %v1374_v37 }
 0x6c6   :  { %v523_v28 = vpop.f32.mrf.mxu1 }
 0x6c7   :  { %v529_v30 = vmul.f32 %v523_v28, %v1285_v53 }
 0x6ce   :  { %v526_v29 = vpop.f32.mrf.mxu1 }
 0x6cf   :  { %v530_v43 = vmul.f32 %v526_v29, %v1283_v51 }
 0x6d1   :  { %545 = vmatpush.msrb.mxu0 %v530_v43 }
 0x6d3   :  { %546 = vmatpush.msrb.mxu0 %v529_v30 }
 0x6d4   :  { %1115 = vmatmul.msk.f32.vlgmr.msrb.gmra.mxu0 %vm50_vm0, %v1289_v56 }
 0x6d6   :  { %v646_v21 = vpop.f32.mrf.mxu1 }
 0x6dc   :  { %1116 = vmatmul.msk.f32.gmra.mxu0 %vm50_vm0, %v1293_v57 }
 0x6de   :  { %v649_v22 = vpop.f32.mrf.mxu1 }
 0x6e6   :  { %v652_v23 = vpop.f32.mrf.mxu1 }
 0x6e7   :  { %v672_v16 = vmul.f32 %v652_v23, %v1394_v63  ;;  %v716_v63 = vld [vmem:[#allocation4 + $0x240] sm:$0xff] }
 0x6ee   :  { %v655_v24 = vpop.f32.mrf.mxu1 }
 0x6ef   :  { %v673_v39 = vmul.f32 %v655_v24, %v1391_v61  ;;  %v987_v24 = vld [vmem:[#allocation4 + $0x2b8] sm:$0xff] }
 0x6f6   :  { %v658_v25 = vpop.f32.mrf.mxu1 }
 0x6f7   :  { %v674_v15 = vmul.f32 %v658_v25, %v1388_v59  ;;  %v717_v59 = vld [vmem:[#allocation4 + $0x248] sm:$0xff] }
 0x6f8   :  { %736 = vmatpush.msra.mxu2 %v717_v59 }
 0x6fa   :  { %737 = vmatpush.msra.mxu2 %v716_v63  ;;  %v756_v63 = vld [vmem:[#allocation4 + $0x280] sm:$0xff] }
 0x6fe   :  { %v661_v26 = vpop.f32.mrf.mxu1 }
 0x6ff   :  { %v675_v13 = vmul.f32 %v661_v26, %v1382_v50 }
 0x706   :  { %v664_v27 = vpop.f32.mrf.mxu1 }
 0x707   :  { %v676_v12 = vmul.f32 %v664_v27, %v1380_v49  ;;  %v671_v49 = vmul.f32 %v649_v22, %v1397_v1  ;;  %v715_v1 = vld [vmem:[#allocation4 + $0x238] sm:$0xff] }
 0x708   :  { %738 = vmatpush.msra.mxu2 %v715_v1 }
 0x70e   :  { %v667_v32 = vpop.f32.mrf.mxu1 }
 0x70f   :  { %v677_v34 = vmul.f32 %v667_v32, %v1384_v52  ;;  %v670_v52 = vmul.f32 %v646_v21, %v1400_v4  ;;  %v714_v4 = vld [vmem:[#allocation4 + $0x230] sm:$0xff] }
 0x710   :  { %739 = vmatpush.msra.mxu2 %v714_v4 }
 0x711   :  { %697 = vmatpush.msra.mxu0 %v677_v34 }
 0x713   :  { %698 = vmatpush.msra.mxu0 %v676_v12 }
 0x715   :  { %699 = vmatpush.msra.mxu0 %v675_v13 }
 0x717   :  { %700 = vmatpush.msra.mxu0 %v674_v15  ;;  %v757_v15 = vld [vmem:[#allocation4 + $0x288] sm:$0xff] }
 0x719   :  { %701 = vmatpush.msra.mxu0 %v673_v39 }
 0x71b   :  { %702 = vmatpush.msra.mxu0 %v672_v16 }
 0x71d   :  { %703 = vmatpush.msra.mxu0 %v671_v49 }
 0x71f   :  { %704 = vmatpush.msra.mxu0 %v670_v52 }
 0x751   :  { %v548_v31 = vpop.f32.mrf.mxu0 }
 0x752   :  { %556 = vrot.lane.b32.xlu2 %v548_v31, %s1245_s1  ;;  %v1247_v31 = vmov 9  }
 0x753   :  { %1168 = vset.pattern.permute.xlu0 %v1247_v31 }
 0x759   :  { %v551_v33 = vpop.f32.mrf.mxu0 }
 0x75a   :  { %558 = vrot.lane.b32.xlu2 %v551_v33, %s1245_s1  ;;  %v763_v33 = vld [vmem:[#allocation4 + $0x250] sm:$0xf] }
 0x75b   :  { %1135 = vmatpush.msk.msra.mxu3 %vm861_vm8, %v763_v33 }
 0x7ac   :  { %v557_v35 = vpop.permute.xlu2 %556 }
 0x7ad   :  { %v562_v36 = vadd.f32 %v557_v35, %v523_v28 }
 0x7af   :  { %vm564_vm6 = vcmp.gt.f32.partialorder %v562_v36, 0.0  ;;  %v566_v51 = vmul.f32 0.2, %v562_v36 }
 0x7b1   :  { %v568_v37 = vsel %vm564_vm6, %v562_v36, %v566_v51  ;;  %v747_v51 = vld [vmem:[#allocation4 + $0x2e8] sm:$0x1] }
 0x7b2   :  { %v570_v53 = vadd.f32 %v568_v37, %v1305_v9  ;;  %v752_v37 = vld [vmem:[#allocation4 + $0x260] sm:$0xff] }
 0x7b4   :  { %v559_v44 = vpop.permute.xlu2 %558  ;;  %v572_v45 = vsel %vm288_vm3, %v570_v53, -inf }
 0x7b5   :  { %v563_v46 = vadd.f32 %v559_v44, %v526_v29  ;;  %573 = vmax.xlane.f32.xlu0 %v572_v45  ;;  %v751_v45 = vld [vmem:[#allocation4 + $0x258] sm:$0xff] }
 0x7b7   :  { %vm565_vm7 = vcmp.gt.f32.partialorder %v563_v46, 0.0  ;;  %v567_v47 = vmul.f32 0.2, %v563_v46 }
 0x7b9   :  { %v569_v48 = vsel %vm565_vm7, %v563_v46, %v567_v47 }
 0x7ba   :  { %v571_v54 = vadd.f32 %v569_v48, %v1301_v2 }
 0x7bc   :  { %v575_v55 = vsel %vm288_vm3, %v571_v54, -inf }
 0x7bd   :  { %576 = vmax.xlane.f32.xlu2 %v575_v55 }
 0x828   :  { %v574_v58 = vpop.xlane.xlu0 %573 }
 0x829   :  { %v578_v60 = vsub.f32 %v570_v53, %v574_v58 }
 0x82b   :  { %v580_v62 = vmul.f32 1.442695, %v578_v60 }
 0x82d   :  { %1180 = vpow2.f32 %v580_v62 }
 0x830   :  { %v577_v0 = vpop.xlane.xlu2 %576 }
 0x831   :  { %v579_v3 = vsub.f32 %v571_v54, %v577_v0 }
 0x833   :  { %v1181_v9 = vpop.eup %1180  ;;  %v582_v5 = vmul.f32 1.442695, %v579_v3 }
 0x834   :  { %586 = vrot.lane.b32.xlu1 %v1181_v9, %s1245_s1 }
 0x835   :  { %1182 = vpow2.f32 %v582_v5 }
 0x83b   :  { %v1183_v6 = vpop.eup %1182 }
 0x83c   :  { %588 = vrot.lane.b32.xlu1 %v1183_v6, %s1245_s1 }
 0x8a6   :  { %v587_v7 = vpop.permute.xlu1 %586 }
 0x8a7   :  { %1117 = vmatmul.msk.f32.vlgmr.msrb.gmra.mxu2 %vm307_vm5, %v587_v7 }
 0x8ae   :  { %v589_v2 = vpop.permute.xlu1 %588 }
 0x8af   :  { %1118 = vmatmul.msk.f32.gmra.mxu2 %vm307_vm5, %v589_v2  ;;  %v988_v2 = vld [vmem:[#allocation4 + $0x2c0] sm:$0xff] }
 0x92a   :  { %v611_v8 = vpop.f32.mrf.mxu2 }
 0x92b   :  { %1184 = vrcp.f32 %v611_v8 }
 0x931   :  { %v1185_v10 = vpop.eup %1184 }
 0x932   :  { %621 = vrot.lane.b32.xlu1 %v1185_v10, %s1245_s1  ;;  %v614_v11 = vpop.f32.mrf.mxu2 }
 0x933   :  { %1186 = vrcp.f32 %v614_v11  ;;  %v754_v11 = vld [vmem:[#allocation4 + $0x270] sm:$0xff] }
 0x939   :  { %v1187_v19 = vpop.eup %1186 }
 0x93a   :  { %623 = vrot.lane.b32.xlu1 %v1187_v19, %s1245_s1  ;;  %v753_v19 = vld [vmem:[#allocation4 + $0x268] sm:$0xff] }
 0x9a4   :  { %v622_v14 = vpop.permute.xlu1 %621 }
 0x9a5   :  { %v627_v38 = vmul.f32 %v1181_v9, %v622_v14  ;;  %v1171_v9 = vld [vmem:[#allocation4 + $0x2e8] ss:$0 sm:$0xff] }
 0x9a7   :  { %681 = vrot.lane.b32.xlu1 %v627_v38, %s1245_s1  ;;  %v755_v38 = vld [vmem:[#allocation4 + $0x278] sm:$0xff] }
 0x9ac   :  { %v624_v50 = vpop.permute.xlu1 %623 }
 0x9ad   :  { %v628_v17 = vmul.f32 %v1183_v6, %v624_v50 }
 0x9af   :  { %683 = vrot.lane.b32.xlu0 %v628_v17, %s1245_s1 }
 0xa19   :  { %v682_v61 = vpop.permute.xlu1 %681 }
 0xa1a   :  { %1127 = vmatmul.msk.f32.vlgmr.msra.gmra.mxu0 %vm307_vm5, %v682_v61 }
 0xa21   :  { %v684_v40 = vpop.permute.xlu0 %683 }
 0xa22   :  { %1128 = vmatmul.msk.f32.gmra.mxu0 %vm307_vm5, %v684_v40  ;;  %v758_v40 = vld [vmem:[#allocation4 + $0x290] sm:$0xff] }
 0xa97   :  { %v706_v41 = vpop.f32.mrf.mxu0 }
 0xa98   :  { %v707_v42 = vadd.f32 %v1170_v20, %v706_v41  ;;  %v992_v41 = vld [vmem:[#allocation4 + $0x2e0] sm:$0xff] }
 0xa9a   :  { %v712_v28 = vmax.f32 %v707_v42, 0.0  ;;  %v991_v42 = vld [vmem:[#allocation4 + $0x2d8] sm:$0xff] }
 0xa9c   :  { %1129 = vmatmul.msk.f32.vlgmr.msra.gmra.mxu2 %vm172_vm1, %v712_v28  ;;  %v990_v28 = vld [vmem:[#allocation4 + $0x2d0] sm:$0xff] }
 0xa9f   :  { %v709_v29 = vpop.f32.mrf.mxu0 }
 0xaa0   :  { %v710_v43 = vadd.f32 %v1170_v20, %v709_v29  ;;  %v989_v29 = vld [vmem:[#allocation4 + $0x2c8] sm:$0xff] }
 0xaa2   :  { %v713_v30 = vmax.f32 %v710_v43, 0.0 }
 0xaa4   :  { %1130 = vmatmul.msk.f32.gmra.mxu2 %vm172_vm1, %v713_v30 }
 0xb1f   :  { %v1471_v35 = vpop.f32.mrf.mxu2 }
 0xb20   :  { %766 = vperm.xlu1 %1166, %v1471_v35   ;;  %v749_v50 = vadd.f32 %v1171_v9, %v1471_v35 }
 0xb27   :  { %v1474_v36 = vpop.f32.mrf.mxu2 }
 0xb28   :  { %852 = vrot.lane.b32.xlu1 %v1471_v35, %s1248_s21  ;;  %854 = vrot.lane.b32.xlu0 %v1474_v36, %s1248_s21 }
 0xb29   :  { %771 = vperm.xlu2 %1165, %v1474_v36   ;;  %1167 = vset.pattern.permute.xlu1 %v1247_v31 }
 0xb30   :  { %888 = vrot.lane.b32.xlu1 %v1471_v35, %s1249_s22  ;;  %800 = vperm.xlu0 %1168, %v1471_v35  }
 0xb31   :  { %890 = vrot.lane.b32.xlu2 %v1474_v36, %s1249_s22 }
 0xb38   :  { %804 = vperm.xlu1 %1167, %v1474_v36  }
 0xb39   :  { %835 = vrot.lane.b32.xlu2 %v747_v51, %s1250_s23 }
 0xb40   :  { %972 = vrot.lane.b32.xlu1 %v1171_v9, %s1251_s24 }
 0xb83   :  { %v1483_v53 = vpop.permute.xlu2 %771 }
 0xb84   :  { %v775_v44 = vmul.f32 %v1483_v53, %v752_v37 }
 0xb86   :  { %790 = vmatpush.msrb.mxu0 %v775_v44 }
 0xb8b   :  { %v891_v0 = vpop.permute.xlu2 %890 }
 0xb92   :  { %v767_v46 = vpop.permute.xlu1 %766 }
 0xb93   :  { %v774_v47 = vmul.f32 %v767_v46, %v751_v45  ;;  %v836_v5 = vpop.permute.xlu2 %835 }
 0xb94   :  { %1151 = vpush %v836_v5 }
 0xb95   :  { %791 = vmatpush.msrb.mxu0 %v774_v47 }
 0xb96   :  { %1131 = vmatmul.msk.f32.vlgmr.msrb.gmra.mxu0 %vm50_vm0, %v1289_v56 }
 0xb97   :  { %1138 = vmatpush.msk.msra.mxu0 %vm861_vm8, %v763_v33 }
 0xb99   :  { %1015 = vmatpush.msrb.mxu0 %v988_v2 }
 0xb9a   :  { %v853_v48 = vpop.permute.xlu1 %852  ;;  %v855_v54 = vpop.permute.xlu0 %854 }
 0xb9b   :  { %1136 = vmatmul.msk.f32.vlgmr.msra.gmra.mxu3 %vm856_vm9, %v853_v48 }
 0xb9e   :  { %1132 = vmatmul.msk.f32.gmra.mxu0 %vm50_vm0, %v1293_v57 }
 0xba2   :  { %v889_v55 = vpop.permute.xlu1 %888  ;;  %v801_v58 = vpop.permute.xlu0 %800 }
 0xba3   :  { %1137 = vmatmul.msk.f32.gmra.mxu3 %vm856_vm9, %v855_v54  ;;  %v807_v3 = vmul.f32 %v801_v58, %v751_v45 }
 0xba6   :  { %1139 = vmatmul.msk.f32.vlgmr.msra.gmra.mxu0 %vm856_vm9, %v889_v55 }
 0xbaa   :  { %v805_v60 = vpop.permute.xlu1 %804 }
 0xbab   :  { %v808_v62 = vmul.f32 %v805_v60, %v752_v37  ;;  %v761_v37 = vld [vmem:[#allocation4 + $0x2a8] sm:$0xff] }
 0xbad   :  { %823 = vmatpush.msrb.mxu2 %v808_v62  ;;  %v760_v62 = vld [vmem:[#allocation4 + $0x2a0] sm:$0xff] }
 0xbae   :  { %1140 = vmatmul.msk.f32.gmra.mxu0 %vm856_vm9, %v891_v0 }
 0xbaf   :  { %824 = vmatpush.msrb.mxu2 %v807_v3 }
 0xbb0   :  { %1133 = vmatmul.msk.f32.vlgmr.msrb.gmra.mxu2 %vm50_vm0, %v1289_v56 }
 0xbb2   :  { %v973_v31 = vpop.permute.xlu1 %972 }
 0xbb8   :  { %1134 = vmatmul.msk.f32.gmra.mxu2 %vm50_vm0, %v1293_v57 }
 0xbc5   :  { %s1152_s25 = spop %1151 }
 0xbc6   :  { %v838_v12 = vstv %s1152_s25 }
 0xc13   :  { %v793_v6 = vpop.f32.mrf.mxu0 }
 0xc14   :  { %v842_v32 = vadd.f32 %v801_v58, %v793_v6 }
 0xc16   :  { %v844_v13 = vadd.f32 %v842_v32, %v838_v12 }
 0xc18   :  { %v848_v16 = vmul.f32 %v844_v13, %v757_v15 }
 0xc1b   :  { %v796_v7 = vpop.f32.mrf.mxu0 }
 0xc1c   :  { %v843_v49 = vadd.f32 %v805_v60, %v796_v7  ;;  %v762_v60 = vld [vmem:[#allocation4 + $0x2b0] sm:$0xff] }
 0xc1e   :  { %v882_v8 = vpop.f32.mrf.mxu3  ;;  %v845_v59 = vadd.f32 %v843_v49, %v838_v12 }
 0xc1f   :  { %v919_v23 = vmul.f32 %v882_v8, %v753_v19 }
 0xc20   :  { %v849_v4 = vmul.f32 %v845_v59, %v758_v40 }
 0xc23   :  { %v913_v10 = vpop.f32.mrf.mxu0 }
 0xc24   :  { %v944_v27 = vmul.f32 %v913_v10, %v753_v19 }
 0xc26   :  { %v1495_v21 = vpop.f32.mrf.mxu3 }
 0xc27   :  { %v920_v22 = vmul.f32 %v1495_v21, %v754_v11 }
 0xc29   :  { %935 = vmatpush.msra.mxu2 %v920_v22 }
 0xc2b   :  { %v916_v25 = vpop.f32.mrf.mxu0  ;;  %936 = vmatpush.msra.mxu2 %v919_v23 }
 0xc2c   :  { %v945_v26 = vmul.f32 %v916_v25, %v754_v11  ;;  %1141 = vmatmul.msk.f32.vlgmr.msra.gmra.mxu2 %vm50_vm0, %v1289_v56 }
 0xc2d   :  { %1044 = vmatpush.msrb.mxu2 %v987_v24 }
 0xc2e   :  { %960 = vmatpush.msrb.mxu3 %v945_v26 }
 0xc30   :  { %961 = vmatpush.msrb.mxu3 %v944_v27 }
 0xc31   :  { %1143 = vmatmul.msk.f32.vlgmr.msrb.gmra.mxu3 %vm50_vm0, %v1289_v56 }
 0xc32   :  { %1070 = vmatpush.msra.mxu3 %v992_v41 }
 0xc33   :  { %v826_v34 = vpop.f32.mrf.mxu2 }
 0xc34   :  { %v832_v14 = vadd.f32 %v826_v34, %v767_v46  ;;  %1142 = vmatmul.msk.f32.gmra.mxu2 %vm50_vm0, %v1293_v57  ;;  %1071 = vmatpush.msra.mxu3 %v991_v42 }
 0xc36   :  { %v840_v39 = vadd.f32 %v838_v12, %v832_v14  ;;  %1072 = vmatpush.msra.mxu3 %v990_v28 }
 0xc38   :  { %v846_v52 = vmul.f32 %v840_v39, %v755_v38  ;;  %1073 = vmatpush.msra.mxu3 %v989_v29 }
 0xc39   :  { %1144 = vmatmul.msk.f32.gmra.mxu3 %vm50_vm0, %v1293_v57  ;;  %v750_v57 = vadd.f32 %v1171_v9, %v1474_v36  ;;  %v759_v36 = vld [vmem:[#allocation4 + $0x298] sm:$0xff] }
 0xc3a   :  { %v850_v17 = vadd.f32 %v848_v16, %v846_v52 }
 0xc3b   :  { %v829_v56 = vpop.f32.mrf.mxu2 }
 0xc3c   :  { %v833_v61 = vadd.f32 %v829_v56, %v1483_v53  ;;  %1145 = vmatmul.msk.f32.vlgmr.msrb.gmra.mxu0 %vm993_vm10, %v850_v17  ;;  %1147 = vmatmul.msk.f32.vlgmr.msrb.gmra.mxu2 %vm993_vm10, %v749_v50 }
 0xc3e   :  { %v841_v1 = vadd.f32 %v838_v12, %v833_v61 }
 0xc40   :  { %v847_v18 = vmul.f32 %v841_v1, %v756_v63 }
 0xc42   :  { %v851_v20 = vadd.f32 %v849_v4, %v847_v18 }
 0xc44   :  { %1146 = vmatmul.msk.f32.gmra.mxu0 %vm993_vm10, %v851_v20  ;;  %1148 = vmatmul.msk.f32.gmra.mxu2 %vm993_vm10, %v750_v57 }
 0xcaf   :  { %v938_v43 = vpop.f32.mrf.mxu2 }
 0xcb0   :  { %v977_v30 = vadd.f32 %v938_v43, %v913_v10 }
 0xcb2   :  { %v979_v35 = vadd.f32 %v977_v30, %v973_v31 }
 0xcb4   :  { %v963_v33 = vpop.f32.mrf.mxu3  ;;  %v983_v45 = vmul.f32 %v979_v35, %v761_v37 }
 0xcb5   :  { %v969_v51 = vadd.f32 %v963_v33, %v882_v8 }
 0xcb7   :  { %v975_v53 = vadd.f32 %v973_v31, %v969_v51  ;;  %v941_v44 = vpop.f32.mrf.mxu2 }
 0xcb8   :  { %v978_v47 = vadd.f32 %v941_v44, %v916_v25 }
 0xcb9   :  { %v981_v46 = vmul.f32 %v975_v53, %v759_v36  ;;  %v1017_v7 = vpop.f32.mrf.mxu0 }
 0xcba   :  { %v980_v55 = vadd.f32 %v978_v47, %v973_v31 }
 0xcbb   :  { %v985_v48 = vadd.f32 %v983_v45, %v981_v46 }
 0xcbc   :  { %v966_v54 = vpop.f32.mrf.mxu3  ;;  %v984_v3 = vmul.f32 %v980_v55, %v762_v60 }
 0xcbd   :  { %v970_v58 = vadd.f32 %v966_v54, %v1495_v21  ;;  %1149 = vmatmul.msk.f32.vlgmr.msra.gmra.mxu3 %vm172_vm1, %v985_v48 }
 0xcbf   :  { %v976_v0 = vadd.f32 %v973_v31, %v970_v58  ;;  %v1046_v6 = vpop.f32.mrf.mxu2 }
 0xcc0   :  { %v1047_v2 = vadd.f32 %v1046_v6, %v1017_v7 }
 0xcc1   :  { %v982_v9 = vmul.f32 %v976_v0, %v760_v62  ;;  %v1020_v19 = vpop.f32.mrf.mxu0 }
 0xcc3   :  { %v986_v5 = vadd.f32 %v984_v3, %v982_v9 }
 0xcc5   :  { %1150 = vmatmul.msk.f32.gmra.mxu3 %vm172_vm1, %v986_v5 }
 0xcc7   :  { %v1049_v11 = vpop.f32.mrf.mxu2 }
 0xcc8   :  { %v1050_v21 = vadd.f32 %v1049_v11, %v1020_v19 }
 0xd40   :  { %v1075_v8 = vpop.f32.mrf.mxu3 }
 0xd41   :  { %v1081_v10 = vadd.f32 %v1075_v8, %v1047_v2 }
 0xd43   :  { %1083 = vst [vmem:[%s1524_s2] sm:$0xff] %v1081_v10 }
 0xd48   :  { %v1078_v22 = vpop.f32.mrf.mxu3 }
 0xd49   :  { %v1082_v23 = vadd.f32 %v1078_v22, %v1050_v21 }
 0xd4b   :  { %1084 = vst [vmem:[%s1524_s2 + $0x8] sm:$0xff] %v1082_v23 }
 0xd4c   :  { %1089 = vsyncpa [#allocation3], 1 }
 0xd4d   :  { %1090 = vsyncpa [#allocation5], 1 }

</bundles_post_ra>
